<compile_context>
chip_gen: v7x
topology: tpu7x:2x2x1
jax: 0.10.0
libtpu: 0.0.40
codegen_flags: <defaults>
</compile_context>

<pallas_src>
import jax
import jax.numpy as jnp
import numpy as np
from jax.experimental import pallas as pl
from jax.experimental.pallas import tpu as pltpu

D = 5                    # conv kernel height == input width
H = 600                  # "length" implied by fc_final(600, 128)
PAD = (D - 1) // 2       # = 2
HP = H + 2 * PAD         # = 604, padded H axis (lane-dense)
HIDDEN = 128
TAPS = D * D             # 25
ROWS = 16                # row-chunk for register-resident conv accumulation
MAX_TILE = 256           # batch-tile cap (VMEM/MXU friendly on all generations)


def _cdiv(a, b):
    return (a + b - 1) // b


def _round_up(a, b):
    return _cdiv(a, b) * b


def _pick_tile(n):
    """Multiple of ROWS; prefers a balanced grid with an even number of steps
    (v7x has 2 TensorCores), capped at MAX_TILE rows per step."""
    n = max(int(n), 1)
    half = _round_up(_cdiv(n, 2), ROWS)
    if half <= MAX_TILE:
        return half                       # grid of 1 or 2 balanced steps
    steps = _cdiv(n, MAX_TILE)
    if steps % 2:
        steps += 1                        # even step count for 2-TC balance
    return _round_up(_cdiv(n, steps), ROWS)


def basicnet_kernel(slabs_ref, fw_ref, fb_ref, cw_ref, cb_ref, o_ref, conv_ref):
    # slabs_ref: (5, TILE_N, 604) bf16 VMEM -- slab[kw, n, j] = x_pad[n, j, kw]
    # fw_ref   : (600, 128)       bf16 VMEM -- fc_final weight, pre-transposed (resident)
    # fb_ref   : (1, 128)          f32 VMEM -- fc_final bias (resident)
    # cw_ref   : (25,)             f32 SMEM -- conv weights (row-major kh, kw)
    # cb_ref   : (1,)              f32 SMEM -- conv bias
    # o_ref    : (TILE_N, 128)     f32 VMEM
    # conv_ref : (TILE_N, 600)    bf16 VMEM scratch -- relu(conv) feeding the MXU
    tile_n = conv_ref.shape[0]
    n_chunks = tile_n // ROWS

    def row_chunk(r, carry):
        base = pl.multiple_of(r * ROWS, ROWS)
        acc = jnp.zeros((ROWS, H), jnp.float32)
        for kw in range(D):                                       # static unroll (5)
            # one kw slab chunk, widened bf16 -> f32 on the VPU
            s = slabs_ref[kw, pl.ds(base, ROWS), :].astype(jnp.float32)   # (ROWS, 604)
            for kh in range(D):                                   # static unroll (5)
                # static lane-shifted view: tap[n, h] = x_pad[n, h + kh, kw]
                acc = acc + s[:, kh:kh + H] * cw_ref[kh * D + kw]
        conv = jnp.maximum(acc + cb_ref[0], 0.0)                  # bias + ReLU, f32
        conv_ref[pl.ds(base, ROWS), :] = conv.astype(jnp.bfloat16)
        return carry

    jax.lax.fori_loop(0, n_chunks, row_chunk, 0)

    # fc_final on the MXU: single-pass bf16 x bf16, f32 accumulate.
    out = jnp.dot(conv_ref[...], fw_ref[...], preferred_element_type=jnp.float32)
    o_ref[...] = out + fb_ref[...]


def basicnet_forward(x, conv_w, conv_b, fc_w, fc_b):
    """x: (N, 1, 600, 5) float32 (NCHW). Returns (N, 128) float32."""
    n = x.shape[0]
    tile_n = _pick_tile(n)
    n_pad = _round_up(n, tile_n)

    # Lane-dense slab layout (H on the 128-lane axis), bf16 to halve HBM traffic.
    x2 = x.reshape(n, H, D).astype(jnp.bfloat16)                     # squeeze C=1
    x2 = jnp.pad(x2, ((0, n_pad - n), (PAD, PAD), (0, 0)))           # (n_pad, 604, 5)
    slabs = jnp.transpose(x2, (2, 0, 1))                             # (5, n_pad, 604)

    cw = conv_w.reshape(TAPS).astype(jnp.float32)                    # (25,)  -> SMEM
    cb = conv_b.reshape(1).astype(jnp.float32)                       # (1,)   -> SMEM
    fw = fc_w.T.astype(jnp.bfloat16)                                 # (600, 128)
    fb = fc_b.reshape(1, HIDDEN).astype(jnp.float32)                 # (1, 128)

    grid = (n_pad // tile_n,)
    out = pl.pallas_call(
        basicnet_kernel,
        out_shape=jax.ShapeDtypeStruct((n_pad, HIDDEN), jnp.float32),
        grid=grid,
        in_specs=[
            pl.BlockSpec((D, tile_n, HP), lambda i: (0, i, 0)),      # batch-tiled slabs
            pl.BlockSpec((H, HIDDEN), lambda i: (0, 0)),             # fc weight, resident
            pl.BlockSpec((1, HIDDEN), lambda i: (0, 0)),             # fc bias, resident
            pl.BlockSpec(memory_space=pltpu.MemorySpace.SMEM),       # conv weights (scalars)
            pl.BlockSpec(memory_space=pltpu.MemorySpace.SMEM),       # conv bias (scalar)
        ],
        out_specs=pl.BlockSpec((tile_n, HIDDEN), lambda i: (i, 0)),
        scratch_shapes=[pltpu.VMEM((tile_n, H), jnp.bfloat16)],      # relu(conv) buffer
        compiler_params=pltpu.CompilerParams(
            dimension_semantics=("parallel",),
            vmem_limit_bytes=32 * 1024 * 1024,
        ),
    )(slabs, fw, fb, cw, cb)
    return out[:n]


basicnet_forward_jit = jax.jit(basicnet_forward)


def reference_forward(x, conv_w, conv_b, fc_w, fc_b):
    """Pure-JAX reference matching PyTorch semantics exactly (f32, HIGHEST)."""
    y = jax.lax.conv_general_dilated(
        x, conv_w.reshape(1, 1, D, D),
        window_strides=(1, 1), padding=((PAD, PAD), (0, 0)),
        dimension_numbers=("NCHW", "OIHW", "NCHW"),
        precision=jax.lax.Precision.HIGHEST)
    y = y + conv_b.reshape(1, 1, 1, 1)
    y = jnp.maximum(y, 0.0)
    y = y.reshape(-1, H)
    return jnp.dot(y, fc_w.T, precision=jax.lax.Precision.HIGHEST) + fc_b


if __name__ == "__main__":
    # Deterministic parameters (PyTorch-style uniform(-1/sqrt(fan_in), +...)).
    kcw, kcb, kfw, kfb, kx1, kx2 = jax.random.split(jax.random.PRNGKey(0), 6)
    cbound = 1.0 / np.sqrt(1 * D * D)
    conv_w = jax.random.uniform(kcw, (1, 1, D, D), jnp.float32, -cbound, cbound)
    conv_b = jax.random.uniform(kcb, (1,), jnp.float32, -cbound, cbound)
    fbound = 1.0 / np.sqrt(H)
    fc_w = jax.random.uniform(kfw, (HIDDEN, H), jnp.float32, -fbound, fbound)
    fc_b = jax.random.uniform(kfb, (HIDDEN,), jnp.float32, -fbound, fbound)

    # Primary small-shape check (N=2), as implied by the module's forward.
    N = 2
    x = jax.random.normal(kx1, (N, 1, H, D), dtype=jnp.float32)
    out = jax.block_until_ready(basicnet_forward_jit(x, conv_w, conv_b, fc_w, fc_b))
    ref = reference_forward(x, conv_w, conv_b, fc_w, fc_b)
    np.testing.assert_allclose(np.asarray(out), np.asarray(ref), rtol=1e-2, atol=1e-2)

    # Second check: multi-step grid (balanced 2 steps) + tail padding.
    N2 = 260
    x2 = jax.random.normal(kx2, (N2, 1, H, D), dtype=jnp.float32)
    out2 = jax.block_until_ready(basicnet_forward_jit(x2, conv_w, conv_b, fc_w, fc_b))
    ref2 = reference_forward(x2, conv_w, conv_b, fc_w, fc_b)
    np.testing.assert_allclose(np.asarray(out2), np.asarray(ref2), rtol=1e-2, atol=1e-2)

    # TODO(synk): conv1 / conv2 / rnn (LSTM) / fc_cls are defined in __init__ but never
    # used in forward(), so they are intentionally not implemented.
    print("KERNEL_OK")
</pallas_src>

<mosaic_0001>
module attributes {stable_mosaic.version = 11 : i64} {
  func.func @basicnet_kernel(%arg0: i32, %arg1: memref<5x16x604xbf16, #tpu.memory_space<vmem>>, %arg2: memref<600x128xbf16, #tpu.memory_space<vmem>>, %arg3: memref<1x128xf32, #tpu.memory_space<vmem>>, %arg4: memref<25xf32, #tpu.memory_space<smem>>, %arg5: memref<1xf32, #tpu.memory_space<smem>>, %arg6: memref<16x128xf32, #tpu.memory_space<vmem>>, %arg7: memref<16x600xbf16, #tpu.memory_space<vmem>>) attributes {dimension_semantics = [#tpu.dimension_semantics<parallel>], iteration_bounds = array<i64: 1>, scalar_prefetch = 0 : i64, scratch_operands = 1 : i64, tpu.core_type = #tpu.core_type<tc>, window_params = [{transform_indices = @transform_0, window_bounds = array<i64: 5, 16, 604>}, {pipeline_mode = #tpu.pipeline_mode<synchronous>, transform_indices = @transform_1, window_bounds = array<i64: 600, 128>}, {pipeline_mode = #tpu.pipeline_mode<synchronous>, transform_indices = @transform_2, window_bounds = array<i64: 1, 128>}, {transform_indices = @transform_3, window_bounds = array<i64: 25>}, {transform_indices = @transform_4, window_bounds = array<i64: 1>}, {transform_indices = @transform_5, window_bounds = array<i64: 16, 128>}]} {
    %c0_i32 = arith.constant 0 : i32
    %c16_i32 = arith.constant 16 : i32
    %0 = arith.muli %c0_i32, %c16_i32 : i32
    %1 = tpu.assume_multiple %0, 16 : i32
    %cst = arith.constant 0.000000e+00 : f32
    %2 = vector.broadcast %cst : f32 to vector<16x600xf32>
    %c0 = arith.constant 0 : index
    %3 = arith.index_cast %1 : i32 to index
    %c0_0 = arith.constant 0 : index
    %4 = vector.load %arg1[%c0, %3, %c0_0] : memref<5x16x604xbf16, #tpu.memory_space<vmem>>, vector<1x16x604xbf16>
    %5 = vector.shape_cast %4 : vector<1x16x604xbf16> to vector<16x604xbf16>
    %6 = arith.extf %5 : vector<16x604xbf16> to vector<16x604xf32>
    %7 = vector.extract_strided_slice %6 {offsets = [0, 0], sizes = [16, 600], strides = [1, 1]} : vector<16x604xf32> to vector<16x600xf32>
    %c0_1 = arith.constant 0 : index
    %8 = memref.load %arg4[%c0_1] : memref<25xf32, #tpu.memory_space<smem>>
    %9 = vector.broadcast %8 : f32 to vector<16x600xf32>
    %10 = arith.mulf %7, %9 : vector<16x600xf32>
    %11 = arith.addf %2, %10 : vector<16x600xf32>
    %12 = vector.extract_strided_slice %6 {offsets = [0, 1], sizes = [16, 600], strides = [1, 1]} : vector<16x604xf32> to vector<16x600xf32>
    %c5 = arith.constant 5 : index
    %13 = memref.load %arg4[%c5] : memref<25xf32, #tpu.memory_space<smem>>
    %14 = vector.broadcast %13 : f32 to vector<16x600xf32>
    %15 = arith.mulf %12, %14 : vector<16x600xf32>
    %16 = arith.addf %11, %15 : vector<16x600xf32>
    %17 = vector.extract_strided_slice %6 {offsets = [0, 2], sizes = [16, 600], strides = [1, 1]} : vector<16x604xf32> to vector<16x600xf32>
    %c10 = arith.constant 10 : index
    %18 = memref.load %arg4[%c10] : memref<25xf32, #tpu.memory_space<smem>>
    %19 = vector.broadcast %18 : f32 to vector<16x600xf32>
    %20 = arith.mulf %17, %19 : vector<16x600xf32>
    %21 = arith.addf %16, %20 : vector<16x600xf32>
    %22 = vector.extract_strided_slice %6 {offsets = [0, 3], sizes = [16, 600], strides = [1, 1]} : vector<16x604xf32> to vector<16x600xf32>
    %c15 = arith.constant 15 : index
    %23 = memref.load %arg4[%c15] : memref<25xf32, #tpu.memory_space<smem>>
    %24 = vector.broadcast %23 : f32 to vector<16x600xf32>
    %25 = arith.mulf %22, %24 : vector<16x600xf32>
    %26 = arith.addf %21, %25 : vector<16x600xf32>
    %27 = vector.extract_strided_slice %6 {offsets = [0, 4], sizes = [16, 600], strides = [1, 1]} : vector<16x604xf32> to vector<16x600xf32>
    %c20 = arith.constant 20 : index
    %28 = memref.load %arg4[%c20] : memref<25xf32, #tpu.memory_space<smem>>
    %29 = vector.broadcast %28 : f32 to vector<16x600xf32>
    %30 = arith.mulf %27, %29 : vector<16x600xf32>
    %31 = arith.addf %26, %30 : vector<16x600xf32>
    %c1 = arith.constant 1 : index
    %32 = arith.index_cast %1 : i32 to index
    %c0_2 = arith.constant 0 : index
    %33 = vector.load %arg1[%c1, %32, %c0_2] : memref<5x16x604xbf16, #tpu.memory_space<vmem>>, vector<1x16x604xbf16>
    %34 = vector.shape_cast %33 : vector<1x16x604xbf16> to vector<16x604xbf16>
    %35 = arith.extf %34 : vector<16x604xbf16> to vector<16x604xf32>
    %36 = vector.extract_strided_slice %35 {offsets = [0, 0], sizes = [16, 600], strides = [1, 1]} : vector<16x604xf32> to vector<16x600xf32>
    %c1_3 = arith.constant 1 : index
    %37 = memref.load %arg4[%c1_3] : memref<25xf32, #tpu.memory_space<smem>>
    %38 = vector.broadcast %37 : f32 to vector<16x600xf32>
    %39 = arith.mulf %36, %38 : vector<16x600xf32>
    %40 = arith.addf %31, %39 : vector<16x600xf32>
    %41 = vector.extract_strided_slice %35 {offsets = [0, 1], sizes = [16, 600], strides = [1, 1]} : vector<16x604xf32> to vector<16x600xf32>
    %c6 = arith.constant 6 : index
    %42 = memref.load %arg4[%c6] : memref<25xf32, #tpu.memory_space<smem>>
    %43 = vector.broadcast %42 : f32 to vector<16x600xf32>
    %44 = arith.mulf %41, %43 : vector<16x600xf32>
    %45 = arith.addf %40, %44 : vector<16x600xf32>
    %46 = vector.extract_strided_slice %35 {offsets = [0, 2], sizes = [16, 600], strides = [1, 1]} : vector<16x604xf32> to vector<16x600xf32>
    %c11 = arith.constant 11 : index
    %47 = memref.load %arg4[%c11] : memref<25xf32, #tpu.memory_space<smem>>
    %48 = vector.broadcast %47 : f32 to vector<16x600xf32>
    %49 = arith.mulf %46, %48 : vector<16x600xf32>
    %50 = arith.addf %45, %49 : vector<16x600xf32>
    %51 = vector.extract_strided_slice %35 {offsets = [0, 3], sizes = [16, 600], strides = [1, 1]} : vector<16x604xf32> to vector<16x600xf32>
    %c16 = arith.constant 16 : index
    %52 = memref.load %arg4[%c16] : memref<25xf32, #tpu.memory_space<smem>>
    %53 = vector.broadcast %52 : f32 to vector<16x600xf32>
    %54 = arith.mulf %51, %53 : vector<16x600xf32>
    %55 = arith.addf %50, %54 : vector<16x600xf32>
    %56 = vector.extract_strided_slice %35 {offsets = [0, 4], sizes = [16, 600], strides = [1, 1]} : vector<16x604xf32> to vector<16x600xf32>
    %c21 = arith.constant 21 : index
    %57 = memref.load %arg4[%c21] : memref<25xf32, #tpu.memory_space<smem>>
    %58 = vector.broadcast %57 : f32 to vector<16x600xf32>
    %59 = arith.mulf %56, %58 : vector<16x600xf32>
    %60 = arith.addf %55, %59 : vector<16x600xf32>
    %c2 = arith.constant 2 : index
    %61 = arith.index_cast %1 : i32 to index
    %c0_4 = arith.constant 0 : index
    %62 = vector.load %arg1[%c2, %61, %c0_4] : memref<5x16x604xbf16, #tpu.memory_space<vmem>>, vector<1x16x604xbf16>
    %63 = vector.shape_cast %62 : vector<1x16x604xbf16> to vector<16x604xbf16>
    %64 = arith.extf %63 : vector<16x604xbf16> to vector<16x604xf32>
    %65 = vector.extract_strided_slice %64 {offsets = [0, 0], sizes = [16, 600], strides = [1, 1]} : vector<16x604xf32> to vector<16x600xf32>
    %c2_5 = arith.constant 2 : index
    %66 = memref.load %arg4[%c2_5] : memref<25xf32, #tpu.memory_space<smem>>
    %67 = vector.broadcast %66 : f32 to vector<16x600xf32>
    %68 = arith.mulf %65, %67 : vector<16x600xf32>
    %69 = arith.addf %60, %68 : vector<16x600xf32>
    %70 = vector.extract_strided_slice %64 {offsets = [0, 1], sizes = [16, 600], strides = [1, 1]} : vector<16x604xf32> to vector<16x600xf32>
    %c7 = arith.constant 7 : index
    %71 = memref.load %arg4[%c7] : memref<25xf32, #tpu.memory_space<smem>>
    %72 = vector.broadcast %71 : f32 to vector<16x600xf32>
    %73 = arith.mulf %70, %72 : vector<16x600xf32>
    %74 = arith.addf %69, %73 : vector<16x600xf32>
    %75 = vector.extract_strided_slice %64 {offsets = [0, 2], sizes = [16, 600], strides = [1, 1]} : vector<16x604xf32> to vector<16x600xf32>
    %c12 = arith.constant 12 : index
    %76 = memref.load %arg4[%c12] : memref<25xf32, #tpu.memory_space<smem>>
    %77 = vector.broadcast %76 : f32 to vector<16x600xf32>
    %78 = arith.mulf %75, %77 : vector<16x600xf32>
    %79 = arith.addf %74, %78 : vector<16x600xf32>
    %80 = vector.extract_strided_slice %64 {offsets = [0, 3], sizes = [16, 600], strides = [1, 1]} : vector<16x604xf32> to vector<16x600xf32>
    %c17 = arith.constant 17 : index
    %81 = memref.load %arg4[%c17] : memref<25xf32, #tpu.memory_space<smem>>
    %82 = vector.broadcast %81 : f32 to vector<16x600xf32>
    %83 = arith.mulf %80, %82 : vector<16x600xf32>
    %84 = arith.addf %79, %83 : vector<16x600xf32>
    %85 = vector.extract_strided_slice %64 {offsets = [0, 4], sizes = [16, 600], strides = [1, 1]} : vector<16x604xf32> to vector<16x600xf32>
    %c22 = arith.constant 22 : index
    %86 = memref.load %arg4[%c22] : memref<25xf32, #tpu.memory_space<smem>>
    %87 = vector.broadcast %86 : f32 to vector<16x600xf32>
    %88 = arith.mulf %85, %87 : vector<16x600xf32>
    %89 = arith.addf %84, %88 : vector<16x600xf32>
    %c3 = arith.constant 3 : index
    %90 = arith.index_cast %1 : i32 to index
    %c0_6 = arith.constant 0 : index
    %91 = vector.load %arg1[%c3, %90, %c0_6] : memref<5x16x604xbf16, #tpu.memory_space<vmem>>, vector<1x16x604xbf16>
    %92 = vector.shape_cast %91 : vector<1x16x604xbf16> to vector<16x604xbf16>
    %93 = arith.extf %92 : vector<16x604xbf16> to vector<16x604xf32>
    %94 = vector.extract_strided_slice %93 {offsets = [0, 0], sizes = [16, 600], strides = [1, 1]} : vector<16x604xf32> to vector<16x600xf32>
    %c3_7 = arith.constant 3 : index
    %95 = memref.load %arg4[%c3_7] : memref<25xf32, #tpu.memory_space<smem>>
    %96 = vector.broadcast %95 : f32 to vector<16x600xf32>
    %97 = arith.mulf %94, %96 : vector<16x600xf32>
    %98 = arith.addf %89, %97 : vector<16x600xf32>
    %99 = vector.extract_strided_slice %93 {offsets = [0, 1], sizes = [16, 600], strides = [1, 1]} : vector<16x604xf32> to vector<16x600xf32>
    %c8 = arith.constant 8 : index
    %100 = memref.load %arg4[%c8] : memref<25xf32, #tpu.memory_space<smem>>
    %101 = vector.broadcast %100 : f32 to vector<16x600xf32>
    %102 = arith.mulf %99, %101 : vector<16x600xf32>
    %103 = arith.addf %98, %102 : vector<16x600xf32>
    %104 = vector.extract_strided_slice %93 {offsets = [0, 2], sizes = [16, 600], strides = [1, 1]} : vector<16x604xf32> to vector<16x600xf32>
    %c13 = arith.constant 13 : index
    %105 = memref.load %arg4[%c13] : memref<25xf32, #tpu.memory_space<smem>>
    %106 = vector.broadcast %105 : f32 to vector<16x600xf32>
    %107 = arith.mulf %104, %106 : vector<16x600xf32>
    %108 = arith.addf %103, %107 : vector<16x600xf32>
    %109 = vector.extract_strided_slice %93 {offsets = [0, 3], sizes = [16, 600], strides = [1, 1]} : vector<16x604xf32> to vector<16x600xf32>
    %c18 = arith.constant 18 : index
    %110 = memref.load %arg4[%c18] : memref<25xf32, #tpu.memory_space<smem>>
    %111 = vector.broadcast %110 : f32 to vector<16x600xf32>
    %112 = arith.mulf %109, %111 : vector<16x600xf32>
    %113 = arith.addf %108, %112 : vector<16x600xf32>
    %114 = vector.extract_strided_slice %93 {offsets = [0, 4], sizes = [16, 600], strides = [1, 1]} : vector<16x604xf32> to vector<16x600xf32>
    %c23 = arith.constant 23 : index
    %115 = memref.load %arg4[%c23] : memref<25xf32, #tpu.memory_space<smem>>
    %116 = vector.broadcast %115 : f32 to vector<16x600xf32>
    %117 = arith.mulf %114, %116 : vector<16x600xf32>
    %118 = arith.addf %113, %117 : vector<16x600xf32>
    %c4 = arith.constant 4 : index
    %119 = arith.index_cast %1 : i32 to index
    %c0_8 = arith.constant 0 : index
    %120 = vector.load %arg1[%c4, %119, %c0_8] : memref<5x16x604xbf16, #tpu.memory_space<vmem>>, vector<1x16x604xbf16>
    %121 = vector.shape_cast %120 : vector<1x16x604xbf16> to vector<16x604xbf16>
    %122 = arith.extf %121 : vector<16x604xbf16> to vector<16x604xf32>
    %123 = vector.extract_strided_slice %122 {offsets = [0, 0], sizes = [16, 600], strides = [1, 1]} : vector<16x604xf32> to vector<16x600xf32>
    %c4_9 = arith.constant 4 : index
    %124 = memref.load %arg4[%c4_9] : memref<25xf32, #tpu.memory_space<smem>>
    %125 = vector.broadcast %124 : f32 to vector<16x600xf32>
    %126 = arith.mulf %123, %125 : vector<16x600xf32>
    %127 = arith.addf %118, %126 : vector<16x600xf32>
    %128 = vector.extract_strided_slice %122 {offsets = [0, 1], sizes = [16, 600], strides = [1, 1]} : vector<16x604xf32> to vector<16x600xf32>
    %c9 = arith.constant 9 : index
    %129 = memref.load %arg4[%c9] : memref<25xf32, #tpu.memory_space<smem>>
    %130 = vector.broadcast %129 : f32 to vector<16x600xf32>
    %131 = arith.mulf %128, %130 : vector<16x600xf32>
    %132 = arith.addf %127, %131 : vector<16x600xf32>
    %133 = vector.extract_strided_slice %122 {offsets = [0, 2], sizes = [16, 600], strides = [1, 1]} : vector<16x604xf32> to vector<16x600xf32>
    %c14 = arith.constant 14 : index
    %134 = memref.load %arg4[%c14] : memref<25xf32, #tpu.memory_space<smem>>
    %135 = vector.broadcast %134 : f32 to vector<16x600xf32>
    %136 = arith.mulf %133, %135 : vector<16x600xf32>
    %137 = arith.addf %132, %136 : vector<16x600xf32>
    %138 = vector.extract_strided_slice %122 {offsets = [0, 3], sizes = [16, 600], strides = [1, 1]} : vector<16x604xf32> to vector<16x600xf32>
    %c19 = arith.constant 19 : index
    %139 = memref.load %arg4[%c19] : memref<25xf32, #tpu.memory_space<smem>>
    %140 = vector.broadcast %139 : f32 to vector<16x600xf32>
    %141 = arith.mulf %138, %140 : vector<16x600xf32>
    %142 = arith.addf %137, %141 : vector<16x600xf32>
    %143 = vector.extract_strided_slice %122 {offsets = [0, 4], sizes = [16, 600], strides = [1, 1]} : vector<16x604xf32> to vector<16x600xf32>
    %c24 = arith.constant 24 : index
    %144 = memref.load %arg4[%c24] : memref<25xf32, #tpu.memory_space<smem>>
    %145 = vector.broadcast %144 : f32 to vector<16x600xf32>
    %146 = arith.mulf %143, %145 : vector<16x600xf32>
    %147 = arith.addf %142, %146 : vector<16x600xf32>
    %c0_10 = arith.constant 0 : index
    %148 = memref.load %arg5[%c0_10] : memref<1xf32, #tpu.memory_space<smem>>
    %149 = vector.broadcast %148 : f32 to vector<16x600xf32>
    %150 = arith.addf %147, %149 : vector<16x600xf32>
    %cst_11 = arith.constant 0.000000e+00 : f32
    %151 = vector.broadcast %cst_11 : f32 to vector<16x600xf32>
    %152 = arith.maximumf %150, %151 : vector<16x600xf32>
    %153 = arith.truncf %152 : vector<16x600xf32> to vector<16x600xbf16>
    %154 = arith.index_cast %1 : i32 to index
    %c0_12 = arith.constant 0 : index
    %155 = vector.load %arg7[%154, %c0_12] : memref<16x600xbf16, #tpu.memory_space<vmem>>, vector<16x600xbf16>
    tpu.vector_store %arg7[%154, %c0_12], %153 {strides = array<i32>} : memref<16x600xbf16, #tpu.memory_space<vmem>>, vector<16x600xbf16>,
    %c1_i32 = arith.constant 1 : i32
    %c0_13 = arith.constant 0 : index
    %c0_14 = arith.constant 0 : index
    %156 = vector.load %arg7[%c0_13, %c0_14] : memref<16x600xbf16, #tpu.memory_space<vmem>>, vector<16x600xbf16>
    %c0_15 = arith.constant 0 : index
    %c0_16 = arith.constant 0 : index
    %157 = vector.load %arg2[%c0_15, %c0_16] : memref<600x128xbf16, #tpu.memory_space<vmem>>, vector<600x128xbf16>
    %cst_17 = arith.constant dense<0.000000e+00> : vector<16x128xf32>
    %158 = tpu.matmul %156, %157, %cst_17 {dimension_numbers = #tpu.dot_dimension_numbers<[1], [0], [0], [1], [0, 0, 1, 1], [], []>} : vector<16x600xbf16>, vector<600x128xbf16>, vector<16x128xf32> -> vector<16x128xf32>
    %c0_18 = arith.constant 0 : index
    %c0_19 = arith.constant 0 : index
    %159 = vector.load %arg3[%c0_18, %c0_19] : memref<1x128xf32, #tpu.memory_space<vmem>>, vector<1x128xf32>
    %160 = vector.broadcast %159 : vector<1x128xf32> to vector<16x128xf32>
    %161 = arith.addf %158, %160 : vector<16x128xf32>
    %c0_20 = arith.constant 0 : index
    %c0_21 = arith.constant 0 : index
    %162 = vector.load %arg6[%c0_20, %c0_21] : memref<16x128xf32, #tpu.memory_space<vmem>>, vector<16x128xf32>
    tpu.vector_store %arg6[%c0_20, %c0_21], %161 {strides = array<i32>} : memref<16x128xf32, #tpu.memory_space<vmem>>, vector<16x128xf32>,
    return
  }
  func.func @transform_0(%arg0: i32) -> (i32, i32, i32) {
    %c0_i32 = arith.constant 0 : i32
    %c0_i32_0 = arith.constant 0 : i32
    %c0_i32_1 = arith.constant 0 : i32
    return %c0_i32, %arg0, %c0_i32_0 : i32, i32, i32
  }
  func.func @transform_1(%arg0: i32) -> (i32, i32) {
    %c0_i32 = arith.constant 0 : i32
    %c0_i32_0 = arith.constant 0 : i32
    %c0_i32_1 = arith.constant 0 : i32
    return %c0_i32, %c0_i32_0 : i32, i32
  }
  func.func @transform_2(%arg0: i32) -> (i32, i32) {
    %c0_i32 = arith.constant 0 : i32
    %c0_i32_0 = arith.constant 0 : i32
    %c0_i32_1 = arith.constant 0 : i32
    return %c0_i32, %c0_i32_0 : i32, i32
  }
  func.func @transform_3(%arg0: i32) -> i32 {
    %c0_i32 = arith.constant 0 : i32
    %c0_i32_0 = arith.constant 0 : i32
    return %c0_i32 : i32
  }
  func.func @transform_4(%arg0: i32) -> i32 {
    %c0_i32 = arith.constant 0 : i32
    %c0_i32_0 = arith.constant 0 : i32
    return %c0_i32 : i32
  }
  func.func @transform_5(%arg0: i32) -> (i32, i32) {
    %c0_i32 = arith.constant 0 : i32
    %c0_i32_0 = arith.constant 0 : i32
    return %arg0, %c0_i32 : i32, i32
  }
}

</mosaic_0001>

<bundles_post_ra>
// kernel: basicnet_forward.1
= control target key start
LH: loop header
LB: loop body
LE: loop exit
PB: predicated region body
PF: predicated region fallthrough
CT: control target
= control target key end

     0   :  { %11 = vsyncpa [#allocation5], 0  ;;  %s4292_s0 = inlined_call_operand.vmem [shape: bf16[5,16,604], index: 0, kind: input, shape index: {}]   ;;  %s4293_s1 = inlined_call_operand.vmem [shape: bf16[600,128], index: 1, kind: input, shape index: {}]   ;;  %s4294_s2 = inlined_call_operand.vmem [shape: f32[1,128], index: 2, kind: input, shape index: {}]   ;;  %s4295_s3 = inlined_call_operand.vmem [shape: f32[25], index: 3, kind: input, shape index: {}]   ;;  %s4296_s4 = inlined_call_operand.<no memory space> [shape: f32[1], index: 4, kind: input, shape index: {}]   ;;  %s4297_s5 = inlined_call_operand.vmem [shape: f32[16,128], index: 5, kind: output, shape index: {}]  }
   0x1   :  { %s24_s20 = sshll.u32 %s4295_s3, 4  ;;  %s25_s20 = int_to_ptr.vmem [resolvable:$true] %s24_s20 }
   0x2   :  { %s2333_s21 = scalar_lea.vmem %s25_s20, 16  ;;  %p2338_p1 = scmp.lt.s32.totalorder %s25_s20, %s25_s20 }
   0x3   :  { %p2334_p0 = scmp.ne.s32.totalorder %s25_s20, %s2333_s21  ;;  %p2339_p2 = scmp.lt.s32.totalorder %s2333_s21, %s2333_s21 }
   0x5   :  { %p2340_p3 = por %p2339_p2, %p2338_p1 }
   0x7   :  { %p2341_p4 = pnand %p2340_p3, %p2334_p0 }
   0x9   :  { %2344 = shalt.err (!%p2341_p4)
}
   0xa   :  { %s2347_s22 = smov [#allocation4]  }
   0xb   :  { %27 = dma.vmem_to_smem %s25_s20, 16, %s2347_s22, [#allocation5]  }
   0xc   :  { %2345 = dma.done.wait [#allocation5], 16  }
   0xd   :  { %2346 = vsyncadd [#allocation5], 4294967280 }
   0xe   :  { %33 = sfence }
   0xf   :  { %v39_v0 = vld [vmem:[%s4292_s0 + $0x8] sm:$0xff]  ;;  %s2133_s25 = sld [smem:[#allocation4 + $0x5]]  ;;  %v38_v1 = vld [vmem:[%s4292_s0] sm:$0xff]  ;;  %v41_v7 = vld [vmem:[%s4292_s0 + $0x14] sm:$0xff]  ;;  %s2348_s6 = smov 127   ;;  %vm118_vm0 = vcmask 1039360  }
  0x10   :  { %v2393_v2 = vunpack.c.l.bf16 %v39_v0  ;;  %v2395_v3 = vunpack.c.l.bf16 %v38_v1  ;;  %v47_v4 = vunpack.c.h.bf16 %v39_v0  ;;  %v2397_v5 = vunpack.c.h.bf16 %v38_v1  ;;  %v40_v8 = vld [vmem:[%s4292_s0 + $0x10] ss:$20 sps:$4 sm:$0xff]   ;;  %v42_v15 = vld [vmem:[%s4292_s0 + $0x1c] sm:$0xff]  ;;  %s2134_s9 = sld [smem:[#allocation4 + $0xa]]  ;;  %s54_s10 = sld [smem:[#allocation4]]  ;;  %v2137_v1 = vld [vmem:[%s4292_s0 + $0x28] sm:$0xff] }
  0x11   :  { %v2410_v13 = vunpack.c.l.bf16 %v41_v7  ;;  %v48_v14 = vunpack.c.l.bf16 %v40_v8  ;;  %v2418_v18 = vunpack.c.l.bf16 %v42_v15  ;;  %v2420_v19 = vunpack.c.h.bf16 %v41_v7  ;;  %s2135_s11 = sld [smem:[#allocation4 + $0xf]]  ;;  %s2136_s12 = sld [smem:[#allocation4 + $0x14]]  ;;  %v2505_v0 = vld [vmem:[%s4292_s0 + $0x30] sm:$0xff] }
  0x12   :  { %v53_v22 = vunpack.c.h.bf16 %v40_v8  ;;  %v52_v23 = vunpack.c.h.bf16 %v42_v15  ;;  %s2349_s13 = smov 126   ;;  %s2350_s14 = smov 125   ;;  %v2517_v7 = vunpack.c.h.bf16 %v2137_v1  ;;  %vm189_vm1 = vcmask 1031168  }
  0x13   :  { %s2144_s15 = sld [smem:[#allocation4 + $0x6]]  ;;  %s2351_s16 = smov 124   ;;  %vm260_vm2 = vcmask 1022976   ;;  %vm331_vm3 = vcmask 1014784   ;;  %vm2353_vm4 = vmmov 0   ;;  %vm1995_vm5 = vcmask 1043456  }
  0x14   :  { %s2146_s26 = sld [smem:[#allocation4 + $0x10]]  ;;  %s2147_s3 = sld [smem:[#allocation4 + $0x15]]  ;;  %vm1678_vm6 = vcmask 719872  }
  0x15   :  { %v77_v6 = vstv %s2133_s25  ;;  %s2145_s25 = sld [smem:[#allocation4 + $0xb]]  ;;  %s2155_s27 = sld [smem:[#allocation4 + $0x7]] }
  0x16   :  { %v80_v9 = vmul.f32 %v77_v6, %v2393_v2  ;;  %v78_v10 = vmul.f32 %v77_v6, %v2395_v3  ;;  %v81_v11 = vmul.f32 %v77_v6, %v47_v4  ;;  %v79_v12 = vmul.f32 %v77_v6, %v2397_v5  ;;  %s2158_s17 = sld [smem:[#allocation4 + $0x16]]  ;;  %s2143_s18 = sld [smem:[#allocation4 + $0x1]] }
  0x17   :  { %v83_v16 = vmul.f32 %v77_v6, %v2410_v13  ;;  %v82_v17 = vmul.f32 %v77_v6, %v48_v14  ;;  %v85_v20 = vmul.f32 %v77_v6, %v2418_v18  ;;  %v84_v21 = vmul.f32 %v77_v6, %v2420_v19  ;;  %s2166_s21 = sld [smem:[#allocation4 + $0x8]]  ;;  %s2167_s29 = sld [smem:[#allocation4 + $0xd]] }
  0x18   :  { %102 = vrot.lane.b32.xlu1 %v80_v9, %s2348_s6  ;;  %98 = vrot.lane.b32.xlu0 %v78_v10, %s2348_s6  ;;  %v87_v24 = vmul.f32 %v77_v6, %v53_v22  ;;  %v86_v25 = vmul.f32 %v77_v6, %v52_v23  ;;  %v148_v26 = vstv %s2134_s9  ;;  %v2428_v27 = vstv %s54_s10  ;;  %s2168_s30 = sld [smem:[#allocation4 + $0x12]]  ;;  %s2169_s7 = sld [smem:[#allocation4 + $0x17]] }
  0x19   :  { %v150_v28 = vmul.f32 %v148_v26, %v2397_v5  ;;  %v149_v29 = vmul.f32 %v148_v26, %v2395_v3  ;;  %v219_v30 = vstv %s2135_s11  ;;  %v2436_v31 = vmul.f32 %v2428_v27, %v2393_v2  ;;  %v2524_v9 = vld [vmem:[%s4292_s0 + $0x44] sm:$0xff]  ;;  %v2140_v10 = vld [vmem:[%s4292_s0 + $0x3c] sm:$0xff]  ;;  %s2177_s10 = sld [smem:[#allocation4 + $0x9]]  ;;  %s2154_s22 = sld [smem:[#allocation4 + $0x2]] }
  0x1a   :  { %v2439_v32 = vmul.f32 %v2428_v27, %v47_v4  ;;  %v2442_v33 = vmul.f32 %v2428_v27, %v48_v14  ;;  %v2444_v34 = vmul.f32 %v219_v30, %v48_v14  ;;  %v290_v35 = vstv %s2136_s12  ;;  %s2156_s12 = sld [smem:[#allocation4 + $0xc]]  ;;  %s3216_s23 = sld [smem:[#allocation4 + $0x3]] }
  0x1b   :  { %v2446_v36 = vmul.f32 %v219_v30, %v47_v4  ;;  %v2448_v37 = vmul.f32 %v219_v30, %v53_v22  ;;  %v2450_v38 = vmul.f32 %v219_v30, %v52_v23  ;;  %v2453_v39 = vmul.f32 %v2428_v27, %v53_v22  ;;  %s3227_s24 = sld [smem:[#allocation4 + $0xe]] }
  0x1c   :  { %104 = vrot.lane.b32.xlu1 %v81_v11, %s2348_s6  ;;  %100 = vrot.lane.b32.xlu0 %v79_v12, %s2348_s6  ;;  %v2457_v40 = vmul.f32 %v2428_v27, %v2418_v18  ;;  %v2460_v41 = vmul.f32 %v2428_v27, %v52_v23  ;;  %v152_v42 = vmul.f32 %v148_v26, %v47_v4  ;;  %v2515_v6 = vunpack.c.l.bf16 %v2505_v0 }
  0x1d   :  { %v151_v43 = vmul.f32 %v148_v26, %v2393_v2  ;;  %v2465_v44 = vmul.f32 %v290_v35, %v48_v14  ;;  %v2467_v45 = vmul.f32 %v290_v35, %v47_v4  ;;  %v2469_v46 = vmul.f32 %v290_v35, %v53_v22 }
  0x1e   :  { %4378 = vst [vmem:[#allocation7_spill] sm:$0xff] %v2457_v40  ;;  %4379 = vst [vmem:[#allocation8_spill] sm:$0xff] %v2460_v41  ;;  %v2471_v47 = vmul.f32 %v290_v35, %v52_v23  ;;  %v154_v48 = vmul.f32 %v148_v26, %v2410_v13  ;;  %v153_v49 = vmul.f32 %v148_v26, %v48_v14  ;;  %v2519_v8 = vstv %s2144_s15  ;;  %s2157_s15 = sld [smem:[#allocation4 + $0x11]] }
  0x1f   :  { %v156_v50 = vmul.f32 %v148_v26, %v2418_v18  ;;  %v155_v51 = vmul.f32 %v148_v26, %v2420_v19  ;;  %v158_v52 = vmul.f32 %v148_v26, %v53_v22  ;;  %v157_v53 = vmul.f32 %v148_v26, %v52_v23  ;;  %4380 = vst [vmem:[#allocation9_spill] sm:$0xff] %v2515_v6 }
  0x20   :  { %108 = vrot.lane.b32.xlu1 %v83_v16, %s2348_s6  ;;  %106 = vrot.lane.b32.xlu0 %v82_v17, %s2348_s6  ;;  %v221_v54 = vmul.f32 %v219_v30, %v2397_v5  ;;  %v220_v55 = vmul.f32 %v219_v30, %v2395_v3  ;;  %v226_v56 = vmul.f32 %v219_v30, %v2420_v19  ;;  %v2536_v14 = vunpack.c.l.bf16 %v2524_v9 }
  0x21   :  { %v222_v57 = vmul.f32 %v219_v30, %v2393_v2  ;;  %v225_v58 = vmul.f32 %v219_v30, %v2410_v13  ;;  %v227_v59 = vmul.f32 %v219_v30, %v2418_v18  ;;  %v293_v60 = vmul.f32 %v290_v35, %v2393_v2 }
  0x22   :  { %v292_v61 = vmul.f32 %v290_v35, %v2397_v5  ;;  %v298_v62 = vmul.f32 %v290_v35, %v2418_v18  ;;  %v297_v63 = vmul.f32 %v290_v35, %v2420_v19  ;;  %v296_v2 = vmul.f32 %v290_v35, %v2410_v13  ;;  %4381 = vst [vmem:[#allocation10_spill] sm:$0xff] %v2536_v14 }
  0x23   :  { %v291_v4 = vmul.f32 %v290_v35, %v2395_v3  ;;  %v405_v11 = vmul.f32 %v2519_v8, %v2515_v6  ;;  %v404_v12 = vmul.f32 %v2519_v8, %v2517_v7  ;;  %v2538_v15 = vunpack.c.h.bf16 %v2140_v10 }
  0x24   :  { %112 = vrot.lane.b32.xlu1 %v85_v20, %s2348_s6  ;;  %110 = vrot.lane.b32.xlu0 %v84_v21, %s2348_s6  ;;  %v410_v16 = vmul.f32 %v2519_v8, %v2536_v14  ;;  %v2546_v18 = vunpack.c.l.bf16 %v2140_v10  ;;  %v2548_v20 = vunpack.c.l.bf16 %v2137_v1  ;;  %v2556_v23 = vstv %s2145_s25  ;;  %v2634_v1 = vld [vmem:[%s4292_s0 + $0x6c] sm:$0xff]  ;;  %s3321_s25 = sld [smem:[#allocation4 + $0x13]] }
  0x25   :  { %v409_v17 = vmul.f32 %v2519_v8, %v2538_v15  ;;  %v480_v26 = vmul.f32 %v2556_v23, %v2536_v14  ;;  %v2576_v35 = vstv %s2146_s26  ;;  %s3379_s26 = sld [smem:[#allocation4 + $0x18]] }
  0x26   :  { %v408_v21 = vmul.f32 %v2519_v8, %v2546_v18  ;;  %v403_v22 = vmul.f32 %v2519_v8, %v2548_v20  ;;  %v473_v30 = vmul.f32 %v2556_v23, %v2548_v20 }
  0x28   :  { %116 = vrot.lane.b32.xlu1 %v87_v24, %s2348_s6  ;;  %114 = vrot.lane.b32.xlu0 %v86_v25, %s2348_s6  ;;  %v475_v24 = vmul.f32 %v2556_v23, %v2515_v6  ;;  %v474_v25 = vmul.f32 %v2556_v23, %v2517_v7 }
  0x2c   :  { %171 = vrot.lane.b32.xlu1 %v150_v28, %s2349_s13  ;;  %169 = vrot.lane.b32.xlu0 %v149_v29, %s2349_s13  ;;  %v479_v28 = vmul.f32 %v2556_v23, %v2538_v15  ;;  %v478_v29 = vmul.f32 %v2556_v23, %v2546_v18 }
  0x30   :  { %175 = vrot.lane.b32.xlu1 %v152_v42, %s2349_s13  ;;  %173 = vrot.lane.b32.xlu0 %v151_v43, %s2349_s13  ;;  %v545_v42 = vmul.f32 %v2576_v35, %v2515_v6  ;;  %v544_v43 = vmul.f32 %v2576_v35, %v2517_v7 }
  0x34   :  { %179 = vrot.lane.b32.xlu1 %v154_v48, %s2349_s13  ;;  %177 = vrot.lane.b32.xlu0 %v153_v49, %s2349_s13  ;;  %v550_v48 = vmul.f32 %v2576_v35, %v2536_v14  ;;  %v549_v49 = vmul.f32 %v2576_v35, %v2538_v15 }
  0x38   :  { %183 = vrot.lane.b32.xlu1 %v156_v50, %s2349_s13  ;;  %181 = vrot.lane.b32.xlu0 %v155_v51, %s2349_s13  ;;  %v548_v50 = vmul.f32 %v2576_v35, %v2546_v18  ;;  %v543_v51 = vmul.f32 %v2576_v35, %v2548_v20 }
  0x3c   :  { %187 = vrot.lane.b32.xlu1 %v158_v52, %s2349_s13  ;;  %185 = vrot.lane.b32.xlu0 %v157_v53, %s2349_s13  ;;  %v2596_v52 = vstv %s2147_s3 }
  0x3d   :  { %v615_v53 = vmul.f32 %v2596_v52, %v2515_v6 }
  0x40   :  { %242 = vrot.lane.b32.xlu1 %v221_v54, %s2350_s14  ;;  %240 = vrot.lane.b32.xlu0 %v220_v55, %s2350_s14  ;;  %v614_v54 = vmul.f32 %v2596_v52, %v2517_v7  ;;  %v620_v55 = vmul.f32 %v2596_v52, %v2536_v14 }
  0x44   :  { %252 = vrot.lane.b32.xlu1 %v226_v56, %s2350_s14  ;;  %244 = vrot.lane.b32.xlu0 %v222_v57, %s2350_s14  ;;  %v619_v56 = vmul.f32 %v2596_v52, %v2538_v15  ;;  %v2613_v57 = vld [vmem:[%s4292_s0 + $0x58] sm:$0xff] }
  0x48   :  { %250 = vrot.lane.b32.xlu1 %v225_v58, %s2350_s14  ;;  %254 = vrot.lane.b32.xlu0 %v227_v59, %s2350_s14  ;;  %v2148_v58 = vld [vmem:[%s4292_s0 + $0x50] sm:$0xff]  ;;  %v618_v59 = vmul.f32 %v2596_v52, %v2546_v18 }
  0x4c   :  { %315 = vrot.lane.b32.xlu1 %v293_v60, %s2351_s16  ;;  %313 = vrot.lane.b32.xlu0 %v292_v61, %s2351_s16  ;;  %v613_v60 = vmul.f32 %v2596_v52, %v2548_v20  ;;  %v2625_v61 = vunpack.c.l.bf16 %v2613_v57 }
  0x4e   :  { %4382 = vst [vmem:[#allocation11_spill] sm:$0xff] %v2625_v61 }
  0x50   :  { %325 = vrot.lane.b32.xlu1 %v298_v62, %s2351_s16  ;;  %323 = vrot.lane.b32.xlu0 %v297_v63, %s2351_s16  ;;  %v2627_v62 = vunpack.c.h.bf16 %v2148_v58  ;;  %v2629_v63 = vstv %s2155_s27 }
  0x52   :  { %v725_v10 = vmul.f32 %v2629_v63, %v2627_v62 }
  0x54   :  { %321 = vrot.lane.b32.xlu1 %v296_v2, %s2351_s16  ;;  %311 = vrot.lane.b32.xlu0 %v291_v4, %s2351_s16  ;;  %v2151_v2 = vld [vmem:[%s4292_s0 + $0x64] sm:$0xff]  ;;  %v726_v4 = vmul.f32 %v2629_v63, %v2625_v61 }
  0x58   :  { %427 = vrot.lane.b32.xlu1 %v405_v11, %s2348_s6  ;;  %425 = vrot.lane.b32.xlu0 %v404_v12, %s2348_s6  ;;  %v2646_v11 = vunpack.c.l.bf16 %v2634_v1  ;;  %v2648_v12 = vunpack.c.h.bf16 %v2151_v2 }
  0x5a   :  { %4383 = vst [vmem:[#allocation12_spill] sm:$0xff] %v2646_v11 }
  0x5c   :  { %437 = vrot.lane.b32.xlu1 %v410_v16, %s2348_s6  ;;  %435 = vrot.lane.b32.xlu0 %v409_v17, %s2348_s6  ;;  %v731_v16 = vmul.f32 %v2629_v63, %v2646_v11  ;;  %v730_v17 = vmul.f32 %v2629_v63, %v2648_v12 }
  0x60   :  { %433 = vrot.lane.b32.xlu1 %v408_v21, %s2348_s6  ;;  %423 = vrot.lane.b32.xlu0 %v403_v22, %s2348_s6  ;;  %v2656_v21 = vunpack.c.l.bf16 %v2151_v2  ;;  %v2658_v22 = vunpack.c.l.bf16 %v2148_v58 }
  0x64   :  { %497 = vrot.lane.b32.xlu1 %v475_v24, %s2349_s13  ;;  %495 = vrot.lane.b32.xlu0 %v474_v25, %s2349_s13 }
  0x68   :  { %507 = vrot.lane.b32.xlu1 %v480_v26, %s2349_s13  ;;  %505 = vrot.lane.b32.xlu0 %v479_v28, %s2349_s13  ;;  %v729_v26 = vmul.f32 %v2629_v63, %v2656_v21  ;;  %v724_v28 = vmul.f32 %v2629_v63, %v2658_v22 }
  0x6c   :  { %503 = vrot.lane.b32.xlu1 %v478_v29, %s2349_s13  ;;  %493 = vrot.lane.b32.xlu0 %v473_v30, %s2349_s13 }
  0x70   :  { %567 = vrot.lane.b32.xlu1 %v545_v42, %s2350_s14  ;;  %565 = vrot.lane.b32.xlu0 %v544_v43, %s2350_s14 }
  0x74   :  { %577 = vrot.lane.b32.xlu1 %v550_v48, %s2350_s14  ;;  %575 = vrot.lane.b32.xlu0 %v549_v49, %s2350_s14  ;;  %v2684_v48 = vstv %s2156_s12 }
  0x75   :  { %v794_v58 = vmul.f32 %v2684_v48, %v2658_v22 }
  0x78   :  { %573 = vrot.lane.b32.xlu1 %v548_v50, %s2350_s14  ;;  %563 = vrot.lane.b32.xlu0 %v543_v51, %s2350_s14  ;;  %v796_v51 = vmul.f32 %v2684_v48, %v2625_v61 }
  0x7c   :  { %637 = vrot.lane.b32.xlu1 %v615_v53, %s2351_s16  ;;  %635 = vrot.lane.b32.xlu0 %v614_v54, %s2351_s16 }
  0x80   :  { %647 = vrot.lane.b32.xlu1 %v620_v55, %s2351_s16  ;;  %645 = vrot.lane.b32.xlu0 %v619_v56, %s2351_s16  ;;  %v799_v56 = vmul.f32 %v2684_v48, %v2656_v21 }
  0x84   :  { %643 = vrot.lane.b32.xlu1 %v618_v59, %s2351_s16  ;;  %633 = vrot.lane.b32.xlu0 %v613_v60, %s2351_s16 }
  0x88   :  { %748 = vrot.lane.b32.xlu1 %v726_v4, %s2348_s6  ;;  %746 = vrot.lane.b32.xlu0 %v725_v10, %s2348_s6  ;;  %v2732_v10 = vstv %s2157_s15 }
  0x8a   :  { %v2660_v24 = vpop.permute.xlu1 %102  ;;  %v2662_v25 = vpop.permute.xlu0 %98 }
  0x8c   :  { %758 = vrot.lane.b32.xlu1 %v731_v16, %s2348_s6  ;;  %756 = vrot.lane.b32.xlu0 %v730_v17, %s2348_s6 }
  0x8e   :  { %v2670_v29 = vpop.permute.xlu1 %104  ;;  %v2672_v30 = vpop.permute.xlu0 %100 }
  0x90   :  { %754 = vrot.lane.b32.xlu1 %v729_v26, %s2348_s6  ;;  %744 = vrot.lane.b32.xlu0 %v724_v28, %s2348_s6  ;;  %v866_v26 = vmul.f32 %v2732_v10, %v2625_v61 }
  0x92   :  { %v2676_v42 = vpop.permute.xlu1 %108  ;;  %v2678_v43 = vpop.permute.xlu0 %106 }
  0x94   :  { %248 = vrot.lane.b32.xlu1 %v2444_v34, %s2350_s14  ;;  %246 = vrot.lane.b32.xlu0 %v2446_v36, %s2350_s14  ;;  %v795_v34 = vmul.f32 %v2684_v48, %v2627_v62 }
  0x96   :  { %v2686_v49 = vpop.permute.xlu1 %112  ;;  %v2688_v50 = vpop.permute.xlu0 %110 }
  0x98   :  { %258 = vrot.lane.b32.xlu1 %v2448_v37, %s2350_s14  ;;  %256 = vrot.lane.b32.xlu0 %v2450_v38, %s2350_s14  ;;  %v801_v37 = vmul.f32 %v2684_v48, %v2646_v11  ;;  %v800_v38 = vmul.f32 %v2684_v48, %v2648_v12 }
  0x9a   :  { %v2698_v53 = vpop.permute.xlu1 %116  ;;  %v2700_v36 = vpop.permute.xlu0 %114 }
  0x9c   :  { %818 = vrot.lane.b32.xlu1 %v796_v51, %s2349_s13  ;;  %816 = vrot.lane.b32.xlu0 %v795_v34, %s2349_s13 }
  0x9e   :  { %v2708_v54 = vpop.permute.xlu1 %171  ;;  %v2710_v55 = vpop.permute.xlu0 %169 }
  0xa0   :  { %828 = vrot.lane.b32.xlu1 %v801_v37, %s2349_s13  ;;  %826 = vrot.lane.b32.xlu0 %v800_v38, %s2349_s13  ;;  %v869_v37 = vmul.f32 %v2732_v10, %v2656_v21  ;;  %v864_v38 = vmul.f32 %v2732_v10, %v2658_v22 }
  0xa2   :  { %v2718_v59 = vpop.permute.xlu1 %175  ;;  %v2720_v60 = vpop.permute.xlu0 %173 }
  0xa3   :  { %4384 = vst [vmem:[#allocation13_spill] sm:$0xff] %v2718_v59  ;;  %4385 = vst [vmem:[#allocation14_spill] sm:$0xff] %v2720_v60 }
  0xa4   :  { %824 = vrot.lane.b32.xlu1 %v799_v56, %s2349_s13  ;;  %814 = vrot.lane.b32.xlu0 %v794_v58, %s2349_s13  ;;  %v2766_v56 = vstv %s2158_s17  ;;  %v57_v58 = vmul.f32 %v2428_v27, %v2397_v5  ;;  %v191_v5 = vsel %vm189_vm1, %v2708_v54, %v2720_v60  ;;  %v61_v60 = vmul.f32 %v2428_v27, %v2410_v13 }
  0xa5   :  { %v935_v14 = vmul.f32 %v2766_v56, %v2627_v62  ;;  %v940_v13 = vmul.f32 %v2766_v56, %v2648_v12  ;;  %v939_v41 = vmul.f32 %v2766_v56, %v2656_v21  ;;  %v934_v40 = vmul.f32 %v2766_v56, %v2658_v22 }
  0xa6   :  { %v2724_v2 = vpop.permute.xlu1 %179  ;;  %v2726_v4 = vpop.permute.xlu0 %177 }
  0xa7   :  { %4386 = vst [vmem:[#allocation15_spill] sm:$0xff] %v2726_v4 }
  0xa8   :  { %319 = vrot.lane.b32.xlu1 %v2465_v44, %s2351_s16  ;;  %317 = vrot.lane.b32.xlu0 %v2467_v45, %s2351_s16  ;;  %v865_v44 = vmul.f32 %v2732_v10, %v2627_v62 }
  0xaa   :  { %v2734_v16 = vpop.permute.xlu1 %183  ;;  %v2736_v17 = vpop.permute.xlu0 %181 }
  0xab   :  { %4387 = vst [vmem:[#allocation16_spill] sm:$0xff] %v2734_v16 }
  0xac   :  { %329 = vrot.lane.b32.xlu1 %v2469_v46, %s2351_s16  ;;  %327 = vrot.lane.b32.xlu0 %v2471_v47, %s2351_s16  ;;  %v871_v46 = vmul.f32 %v2732_v10, %v2646_v11  ;;  %v870_v47 = vmul.f32 %v2732_v10, %v2648_v12 }
  0xae   :  { %v2746_v45 = vpop.permute.xlu1 %187  ;;  %v2748_v28 = vpop.permute.xlu0 %185 }
  0xaf   :  { %4388 = vst [vmem:[#allocation17_spill] sm:$0xff] %v2746_v45  ;;  %4389 = vst [vmem:[#allocation18_spill] sm:$0xff] %v2748_v28  ;;  %v62_v28 = vmul.f32 %v2428_v27, %v2420_v19  ;;  %v124_v19 = vsel %vm118_vm0, %v2688_v50, %v2686_v49 }
  0xb0   :  { %888 = vrot.lane.b32.xlu1 %v866_v26, %s2350_s14  ;;  %886 = vrot.lane.b32.xlu0 %v865_v44, %s2350_s14 }
  0xb2   :  { %v2756_v51 = vpop.permute.xlu1 %242  ;;  %v2758_v34 = vpop.permute.xlu0 %240 }
  0xb4   :  { %898 = vrot.lane.b32.xlu1 %v871_v46, %s2350_s14  ;;  %896 = vrot.lane.b32.xlu0 %v870_v47, %s2350_s14  ;;  %v120_v46 = vsel %vm118_vm0, %v2672_v30, %v2660_v24  ;;  %v936_v47 = vmul.f32 %v2766_v56, %v2625_v61  ;;  %v56_v61 = vmul.f32 %v2428_v27, %v2395_v3 }
  0xb5   :  { %v138_v45 = vadd.f32 %v120_v46, %v57_v58  ;;  %v941_v3 = vmul.f32 %v2766_v56, %v2646_v11  ;;  %v195_v27 = vsel %vm189_vm1, %v2736_v17, %v2734_v16  ;;  %v119_v16 = vsel %vm118_vm0, %v2662_v25, %v2672_v30 }
  0xb6   :  { %v253_v26 = vpop.permute.xlu1 %252  ;;  %v2770_v44 = vpop.permute.xlu0 %244  ;;  %v190_v25 = vsel %vm189_vm1, %v2710_v55, %v2708_v54  ;;  %v194_v30 = vsel %vm189_vm1, %v2724_v2, %v2736_v17  ;;  %v261_v54 = vsel %vm260_vm2, %v2758_v34, %v2756_v51 }
  0xb7   :  { %4390 = vst [vmem:[#allocation19_spill] sm:$0xff] %v2770_v44  ;;  %v262_v58 = vsel %vm260_vm2, %v2756_v51, %v2770_v44  ;;  %v209_v46 = vadd.f32 %v191_v5, %v138_v45  ;;  %v2815_v44 = vunpack.c.h.bf16 %v2505_v0  ;;  %v123_v0 = vsel %vm118_vm0, %v2676_v42, %v2688_v50 }
  0xb8   :  { %894 = vrot.lane.b32.xlu1 %v869_v37, %s2350_s14  ;;  %884 = vrot.lane.b32.xlu0 %v864_v38, %s2350_s14  ;;  %v2139_v37 = vld [vmem:[%s4292_s0 + $0x38] ss:$20 sps:$4 sm:$0xff]   ;;  %v2791_v38 = vstv %s2143_s18 }
  0xb9   :  { %v2812_v6 = vunpack.c.l.bf16 %v2139_v37  ;;  %v382_v45 = vmul.f32 %v2791_v38, %v2517_v7  ;;  %v406_v50 = vmul.f32 %v2519_v8, %v2815_v44  ;;  %v2859_v17 = vunpack.c.h.bf16 %v2139_v37 }
  0xba   :  { %v251_v4 = vpop.permute.xlu1 %250  ;;  %v2786_v59 = vpop.permute.xlu0 %254  ;;  %v386_v51 = vmul.f32 %v2791_v38, %v2546_v18  ;;  %v381_v37 = vmul.f32 %v2791_v38, %v2548_v20 }
  0xbb   :  { %4391 = vst [vmem:[#allocation20_spill] sm:$0xff] %v2786_v59  ;;  %v266_v7 = vsel %vm260_vm2, %v253_v26, %v2786_v59  ;;  %v407_v42 = vmul.f32 %v2519_v8, %v2812_v6  ;;  %v265_v55 = vsel %vm260_vm2, %v251_v4, %v253_v26 }
  0xbc   :  { %958 = vrot.lane.b32.xlu1 %v936_v47, %s2351_s16  ;;  %956 = vrot.lane.b32.xlu0 %v935_v14, %s2351_s16  ;;  %v143_v14 = vadd.f32 %v124_v19, %v62_v28  ;;  %v280_v47 = vadd.f32 %v262_v58, %v209_v46  ;;  %v387_v46 = vmul.f32 %v2791_v38, %v2538_v15 }
  0xbe   :  { %v2819_v5 = vpop.permute.xlu1 %315  ;;  %v314_v11 = vpop.permute.xlu0 %313  ;;  %v214_v19 = vadd.f32 %v195_v27, %v143_v14  ;;  %v142_v27 = vadd.f32 %v123_v0, %v61_v60 }
  0xbf   :  { %4392 = vst [vmem:[#allocation21_spill] sm:$0xff] %v2819_v5  ;;  %v333_v28 = vsel %vm331_vm3, %v314_v11, %v2819_v5 }
  0xc0   :  { %v351_v58 = vadd.f32 %v333_v28, %v280_v47  ;;  %968 = vrot.lane.b32.xlu1 %v941_v3, %s2351_s16  ;;  %966 = vrot.lane.b32.xlu0 %v940_v13, %s2351_s16  ;;  %v137_v3 = vadd.f32 %v119_v16, %v56_v61  ;;  %v285_v13 = vadd.f32 %v266_v7, %v214_v19  ;;  %v2864_v16 = vunpack.c.h.bf16 %v2524_v9 }
  0xc1   :  { %v213_v61 = vadd.f32 %v194_v30, %v142_v27  ;;  %v476_v30 = vmul.f32 %v2556_v23, %v2815_v44  ;;  %v482_v27 = vmul.f32 %v2556_v23, %v2859_v17 }
  0xc2   :  { %v2849_v14 = vpop.permute.xlu1 %325  ;;  %v324_v15 = vpop.permute.xlu0 %323  ;;  %v2851_v47 = vadd.f32 %v382_v45, %v351_v58  ;;  %v208_v28 = vadd.f32 %v190_v25, %v137_v3  ;;  %v411_v18 = vmul.f32 %v2519_v8, %v2864_v16  ;;  %v477_v25 = vmul.f32 %v2556_v23, %v2812_v6 }
  0xc3   :  { %4393 = vst [vmem:[#allocation22_spill] sm:$0xff] %v2849_v14  ;;  %v337_v2 = vsel %vm331_vm3, %v324_v15, %v2849_v14  ;;  %v284_v4 = vadd.f32 %v265_v55, %v213_v61  ;;  %v2917_v55 = vstv %s2166_s21 }
  0xc4   :  { %v356_v60 = vadd.f32 %v337_v2, %v285_v13  ;;  %964 = vrot.lane.b32.xlu1 %v939_v41, %s2351_s16  ;;  %954 = vrot.lane.b32.xlu0 %v934_v40, %s2351_s16  ;;  %v279_v34 = vadd.f32 %v261_v54, %v208_v28  ;;  %v412_v40 = vmul.f32 %v2519_v8, %v2859_v17  ;;  %v2897_v8 = vld [vmem:[%s4292_s0 + $0x80] sm:$0xff]  ;;  %v2922_v2 = vld [vmem:[%s4292_s0 + $0x94] sm:$0xff] }
  0xc5   :  { %4394 = vst [vmem:[#allocation23_spill] sm:$0xff] %v2897_v8  ;;  %v481_v13 = vmul.f32 %v2556_v23, %v2864_v16  ;;  %4396 = vst [vmem:[#allocation25_spill] sm:$0xff] %v2917_v55  ;;  %v2162_v28 = vld [vmem:[%s4292_s0 + $0x8c] sm:$0xff] }
  0xc6   :  { %v322_v26 = vpop.permute.xlu1 %321  ;;  %v312_v45 = vpop.permute.xlu0 %311  ;;  %v2868_v0 = vadd.f32 %v387_v46, %v356_v60  ;;  %4397 = vst [vmem:[#allocation26_spill] sm:$0xff] %v2922_v2 }
  0xc7   :  { %v336_v7 = vsel %vm331_vm3, %v322_v26, %v324_v15  ;;  %v332_v41 = vsel %vm331_vm3, %v312_v45, %v314_v11  ;;  %v2913_v15 = vunpack.c.l.bf16 %v2897_v8 }
  0xc8   :  { %v355_v9 = vadd.f32 %v336_v7, %v284_v4  ;;  %v350_v19 = vadd.f32 %v332_v41, %v279_v34  ;;  %431 = vrot.lane.b32.xlu1 %v407_v42, %s2348_s6  ;;  %429 = vrot.lane.b32.xlu0 %v406_v50, %s2348_s6  ;;  %v2159_v42 = vld [vmem:[%s4292_s0 + $0x78] sm:$0xff]  ;;  %v2938_v34 = vunpack.c.l.bf16 %v2922_v2  ;;  %v2940_v4 = vunpack.c.h.bf16 %v2162_v28 }
  0xc9   :  { %4395 = vst [vmem:[#allocation24_spill] sm:$0xff] %v2913_v15  ;;  %v2915_v54 = vunpack.c.h.bf16 %v2159_v42  ;;  %v1047_v23 = vmul.f32 %v2917_v55, %v2913_v15 }
  0xca   :  { %v2880_v58 = vpop.permute.xlu1 %427  ;;  %v2882_v20 = vpop.permute.xlu0 %425  ;;  %v2884_v46 = vadd.f32 %v386_v51, %v355_v9  ;;  %v2886_v11 = vadd.f32 %v381_v37, %v350_v19  ;;  %4398 = vst [vmem:[#allocation27_spill] sm:$0xff] %v2938_v34  ;;  %v2947_v37 = vunpack.c.l.bf16 %v2159_v42  ;;  %v1052_v7 = vmul.f32 %v2917_v55, %v2938_v34 }
  0xcb   :  { %v1046_v51 = vmul.f32 %v2917_v55, %v2915_v54  ;;  %v1051_v41 = vmul.f32 %v2917_v55, %v2940_v4 }
  0xcc   :  { %441 = vrot.lane.b32.xlu1 %v412_v40, %s2348_s6  ;;  %439 = vrot.lane.b32.xlu0 %v411_v18, %s2348_s6  ;;  %4399 = vst [vmem:[#allocation28_spill] sm:$0xff] %v2947_v37  ;;  %v2954_v40 = vunpack.c.l.bf16 %v2162_v28 }
  0xce   :  { %v2902_v50 = vpop.permute.xlu1 %437  ;;  %v2904_v3 = vpop.permute.xlu0 %435  ;;  %v1050_v18 = vmul.f32 %v2917_v55, %v2954_v40 }
  0xd0   :  { %501 = vrot.lane.b32.xlu1 %v477_v25, %s2349_s13  ;;  %499 = vrot.lane.b32.xlu0 %v476_v30, %s2349_s13  ;;  %v1045_v25 = vmul.f32 %v2917_v55, %v2947_v37 }
  0xd2   :  { %v2927_v61 = vpop.permute.xlu1 %433  ;;  %v2929_v60 = vpop.permute.xlu0 %423 }
  0xd4   :  { %511 = vrot.lane.b32.xlu1 %v482_v27, %s2349_s13  ;;  %509 = vrot.lane.b32.xlu0 %v481_v13, %s2349_s13  ;;  %v547_v27 = vmul.f32 %v2576_v35, %v2812_v6  ;;  %v546_v13 = vmul.f32 %v2576_v35, %v2815_v44 }
  0xd6   :  { %v2942_v26 = vpop.permute.xlu1 %497  ;;  %v2944_v45 = vpop.permute.xlu0 %495 }
  0xd8   :  { %1069 = vrot.lane.b32.xlu1 %v1047_v23, %s2348_s6  ;;  %1067 = vrot.lane.b32.xlu0 %v1046_v51, %s2348_s6  ;;  %v552_v51 = vmul.f32 %v2576_v35, %v2859_v17 }
  0xda   :  { %v2956_v9 = vpop.permute.xlu1 %507  ;;  %v2958_v19 = vpop.permute.xlu0 %505 }
  0xdc   :  { %1079 = vrot.lane.b32.xlu1 %v1052_v7, %s2348_s6  ;;  %1077 = vrot.lane.b32.xlu0 %v1051_v41, %s2348_s6  ;;  %v551_v7 = vmul.f32 %v2576_v35, %v2864_v16  ;;  %v2986_v41 = vstv %s2167_s29 }
  0xdd   :  { %4400 = vst [vmem:[#allocation29_spill] sm:$0xff] %v2986_v41  ;;  %v1122_v35 = vmul.f32 %v2986_v41, %v2938_v34  ;;  %v1120_v14 = vmul.f32 %v2986_v41, %v2954_v40 }
  0xde   :  { %v2966_v30 = vpop.permute.xlu1 %503  ;;  %v2968_v42 = vpop.permute.xlu0 %493 }
  0xe0   :  { %1075 = vrot.lane.b32.xlu1 %v1050_v18, %s2348_s6  ;;  %1065 = vrot.lane.b32.xlu0 %v1045_v25, %s2348_s6 }
  0xe2   :  { %v2976_v28 = vpop.permute.xlu1 %567  ;;  %v2978_v23 = vpop.permute.xlu0 %565 }
  0xe4   :  { %571 = vrot.lane.b32.xlu1 %v547_v27, %s2350_s14  ;;  %569 = vrot.lane.b32.xlu0 %v546_v13, %s2350_s14  ;;  %v1117_v27 = vmul.f32 %v2986_v41, %v2913_v15  ;;  %v1116_v13 = vmul.f32 %v2986_v41, %v2915_v54 }
  0xe6   :  { %v2988_v18 = vpop.permute.xlu1 %577  ;;  %v2990_v25 = vpop.permute.xlu0 %575 }
  0xe7   :  { %4401 = vst [vmem:[#allocation30_spill] sm:$0xff] %v2990_v25 }
  0xe8   :  { %581 = vrot.lane.b32.xlu1 %v552_v51, %s2350_s14  ;;  %579 = vrot.lane.b32.xlu0 %v551_v7, %s2350_s14  ;;  %v1121_v51 = vmul.f32 %v2986_v41, %v2940_v4 }
  0xea   :  { %v2998_v2 = vpop.permute.xlu1 %573  ;;  %v3000_v55 = vpop.permute.xlu0 %563 }
  0xeb   :  { %4402 = vst [vmem:[#allocation31_spill] sm:$0xff] %v2998_v2  ;;  %4403 = vst [vmem:[#allocation32_spill] sm:$0xff] %v3000_v55  ;;  %v3207_v2 = vstv %s2154_s22 }
  0xec   :  { %1139 = vrot.lane.b32.xlu1 %v1117_v27, %s2349_s13  ;;  %1137 = vrot.lane.b32.xlu0 %v1116_v13, %s2349_s13  ;;  %v1115_v27 = vmul.f32 %v2986_v41, %v2947_v37  ;;  %v622_v41 = vmul.f32 %v2596_v52, %v2859_v17  ;;  %4449 = vst [vmem:[#allocation78_spill] sm:$0xff] %v3207_v2 }
  0xee   :  { %v3008_v7 = vpop.permute.xlu1 %637  ;;  %v3010_v8 = vpop.permute.xlu0 %635 }
  0xef   :  { %4404 = vst [vmem:[#allocation33_spill] sm:$0xff] %v3008_v7  ;;  %4405 = vst [vmem:[#allocation34_spill] sm:$0xff] %v3010_v8 }
  0xf0   :  { %1149 = vrot.lane.b32.xlu1 %v1122_v35, %s2349_s13  ;;  %1147 = vrot.lane.b32.xlu0 %v1121_v51, %s2349_s13  ;;  %v617_v35 = vmul.f32 %v2596_v52, %v2812_v6  ;;  %v616_v51 = vmul.f32 %v2596_v52, %v2815_v44 }
  0xf2   :  { %v3018_v13 = vpop.permute.xlu1 %647  ;;  %v3020_v5 = vpop.permute.xlu0 %645 }
  0xf3   :  { %4406 = vst [vmem:[#allocation35_spill] sm:$0xff] %v3018_v13  ;;  %4407 = vst [vmem:[#allocation36_spill] sm:$0xff] %v3020_v5 }
  0xf4   :  { %1145 = vrot.lane.b32.xlu1 %v1120_v14, %s2349_s13  ;;  %1135 = vrot.lane.b32.xlu0 %v1115_v27, %s2349_s13  ;;  %v621_v14 = vmul.f32 %v2596_v52, %v2864_v16  ;;  %v3038_v27 = vstv %s2168_s30 }
  0xf5   :  { %4410 = vst [vmem:[#allocation39_spill] sm:$0xff] %v3038_v27 }
  0xf6   :  { %v3028_v59 = vpop.permute.xlu1 %643  ;;  %v3030_v8 = vpop.permute.xlu0 %633 }
  0xf7   :  { %4408 = vst [vmem:[#allocation37_spill] sm:$0xff] %v3028_v59  ;;  %4409 = vst [vmem:[#allocation38_spill] sm:$0xff] %v3030_v8 }
  0xf8   :  { %641 = vrot.lane.b32.xlu1 %v617_v35, %s2351_s16  ;;  %639 = vrot.lane.b32.xlu0 %v616_v51, %s2351_s16  ;;  %v1187_v35 = vmul.f32 %v3038_v27, %v2913_v15  ;;  %v1186_v51 = vmul.f32 %v3038_v27, %v2915_v54 }
  0xfa   :  { %v3040_v5 = vpop.permute.xlu1 %748  ;;  %v3042_v13 = vpop.permute.xlu0 %746 }
  0xfb   :  { %4411 = vst [vmem:[#allocation40_spill] sm:$0xff] %v3040_v5  ;;  %4412 = vst [vmem:[#allocation41_spill] sm:$0xff] %v3042_v13 }
  0xfc   :  { %651 = vrot.lane.b32.xlu1 %v622_v41, %s2351_s16  ;;  %649 = vrot.lane.b32.xlu0 %v621_v14, %s2351_s16  ;;  %v1192_v41 = vmul.f32 %v3038_v27, %v2938_v34  ;;  %v1191_v14 = vmul.f32 %v3038_v27, %v2940_v4 }
  0xfe   :  { %v3050_v8 = vpop.permute.xlu1 %758  ;;  %v3052_v52 = vpop.permute.xlu0 %756 }
  0xff   :  { %4413 = vst [vmem:[#allocation42_spill] sm:$0xff] %v3050_v8  ;;  %4414 = vst [vmem:[#allocation43_spill] sm:$0xff] %v3052_v52  ;;  %v1190_v52 = vmul.f32 %v3038_v27, %v2954_v40 }
 0x100   :  { %1209 = vrot.lane.b32.xlu1 %v1187_v35, %s2350_s14  ;;  %1207 = vrot.lane.b32.xlu0 %v1186_v51, %s2350_s14  ;;  %v1185_v35 = vmul.f32 %v3038_v27, %v2947_v37  ;;  %v3070_v51 = vstv %s2169_s7 }
 0x101   :  { %4417 = vst [vmem:[#allocation46_spill] sm:$0xff] %v3070_v51  ;;  %v1262_v27 = vmul.f32 %v3070_v51, %v2938_v34 }
 0x102   :  { %v3060_v13 = vpop.permute.xlu1 %754  ;;  %v3062_v5 = vpop.permute.xlu0 %744 }
 0x103   :  { %4415 = vst [vmem:[#allocation44_spill] sm:$0xff] %v3060_v13  ;;  %4416 = vst [vmem:[#allocation45_spill] sm:$0xff] %v3062_v5 }
 0x104   :  { %1219 = vrot.lane.b32.xlu1 %v1192_v41, %s2350_s14  ;;  %1217 = vrot.lane.b32.xlu0 %v1191_v14, %s2350_s14  ;;  %v1257_v41 = vmul.f32 %v3070_v51, %v2913_v15  ;;  %v1256_v14 = vmul.f32 %v3070_v51, %v2915_v54 }
 0x106   :  { %v3072_v8 = vpop.permute.xlu1 %248  ;;  %v3074_v59 = vpop.permute.xlu0 %246 }
 0x107   :  { %4418 = vst [vmem:[#allocation47_spill] sm:$0xff] %v3072_v8  ;;  %4419 = vst [vmem:[#allocation48_spill] sm:$0xff] %v3074_v59 }
 0x108   :  { %1215 = vrot.lane.b32.xlu1 %v1190_v52, %s2350_s14  ;;  %1205 = vrot.lane.b32.xlu0 %v1185_v35, %s2350_s14  ;;  %v1261_v52 = vmul.f32 %v3070_v51, %v2940_v4  ;;  %v2150_v35 = vld [vmem:[%s4292_s0 + $0x60] ss:$20 sps:$4 sm:$0xff]  }
 0x109   :  { %v3108_v34 = vunpack.c.l.bf16 %v2150_v35 }
 0x10a   :  { %v3082_v5 = vpop.permute.xlu1 %258  ;;  %v3084_v13 = vpop.permute.xlu0 %256 }
 0x10b   :  { %4420 = vst [vmem:[#allocation49_spill] sm:$0xff] %v3082_v5  ;;  %4421 = vst [vmem:[#allocation50_spill] sm:$0xff] %v3084_v13  ;;  %v3100_v5 = vunpack.c.h.bf16 %v2613_v57  ;;  %v728_v57 = vmul.f32 %v2629_v63, %v3108_v34 }
 0x10c   :  { %1279 = vrot.lane.b32.xlu1 %v1257_v41, %s2351_s16  ;;  %1277 = vrot.lane.b32.xlu0 %v1256_v14, %s2351_s16  ;;  %v1260_v41 = vmul.f32 %v3070_v51, %v2954_v40  ;;  %v1255_v14 = vmul.f32 %v3070_v51, %v2947_v37  ;;  %4425 = vst [vmem:[#allocation54_spill] sm:$0xff] %v3108_v34 }
 0x10d   :  { %4424 = vst [vmem:[#allocation53_spill] sm:$0xff] %v3100_v5 }
 0x10e   :  { %v3095_v15 = vpop.permute.xlu1 %818  ;;  %v3097_v8 = vpop.permute.xlu0 %816 }
 0x10f   :  { %4422 = vst [vmem:[#allocation51_spill] sm:$0xff] %v3095_v15  ;;  %4423 = vst [vmem:[#allocation52_spill] sm:$0xff] %v3097_v8  ;;  %v3115_v8 = vunpack.c.h.bf16 %v2634_v1 }
 0x110   :  { %1289 = vrot.lane.b32.xlu1 %v1262_v27, %s2351_s16  ;;  %1287 = vrot.lane.b32.xlu0 %v1261_v52, %s2351_s16  ;;  %v727_v27 = vmul.f32 %v2629_v63, %v3100_v5  ;;  %v3123_v52 = vunpack.c.h.bf16 %v2150_v35  ;;  %v798_v35 = vmul.f32 %v2684_v48, %v3108_v34 }
 0x111   :  { %4428 = vst [vmem:[#allocation57_spill] sm:$0xff] %v3115_v8 }
 0x112   :  { %v3110_v13 = vpop.permute.xlu1 %828  ;;  %v3112_v15 = vpop.permute.xlu0 %826  ;;  %4429 = vst [vmem:[#allocation58_spill] sm:$0xff] %v3123_v52  ;;  %v733_v1 = vmul.f32 %v2629_v63, %v3123_v52 }
 0x113   :  { %4426 = vst [vmem:[#allocation55_spill] sm:$0xff] %v3110_v13  ;;  %4427 = vst [vmem:[#allocation56_spill] sm:$0xff] %v3112_v15 }
 0x114   :  { %1285 = vrot.lane.b32.xlu1 %v1260_v41, %s2351_s16  ;;  %1275 = vrot.lane.b32.xlu0 %v1255_v14, %s2351_s16  ;;  %v732_v41 = vmul.f32 %v2629_v63, %v3115_v8  ;;  %v2170_v63 = vld [vmem:[%s4292_s0 + $0xa0] sm:$0xff] }
 0x116   :  { %v3125_v51 = vpop.permute.xlu1 %824  ;;  %v3127_v37 = vpop.permute.xlu0 %814 }
 0x117   :  { %4430 = vst [vmem:[#allocation59_spill] sm:$0xff] %v3125_v51  ;;  %4431 = vst [vmem:[#allocation60_spill] sm:$0xff] %v3127_v37  ;;  %v802_v51 = vmul.f32 %v2684_v48, %v3115_v8 }
 0x118   :  { %752 = vrot.lane.b32.xlu1 %v728_v57, %s2348_s6  ;;  %750 = vrot.lane.b32.xlu0 %v727_v27, %s2348_s6  ;;  %v797_v57 = vmul.f32 %v2684_v48, %v3100_v5  ;;  %v3148_v27 = vld [vmem:[%s4292_s0 + $0xa8] sm:$0xff] }
 0x119   :  { %4434 = vst [vmem:[#allocation63_spill] sm:$0xff] %v3148_v27  ;;  %v3164_v13 = vunpack.c.l.bf16 %v3148_v27 }
 0x11a   :  { %v3135_v14 = vpop.permute.xlu1 %319  ;;  %v3137_v15 = vpop.permute.xlu0 %317 }
 0x11b   :  { %4432 = vst [vmem:[#allocation61_spill] sm:$0xff] %v3135_v14  ;;  %4433 = vst [vmem:[#allocation62_spill] sm:$0xff] %v3137_v15  ;;  %v3166_v14 = vunpack.c.h.bf16 %v2170_v63  ;;  %v3168_v15 = vstv %s2177_s10 }
 0x11c   :  { %762 = vrot.lane.b32.xlu1 %v733_v1, %s2348_s6  ;;  %760 = vrot.lane.b32.xlu0 %v732_v41, %s2348_s6  ;;  %v803_v41 = vmul.f32 %v2684_v48, %v3123_v52  ;;  %4437 = vst [vmem:[#allocation66_spill] sm:$0xff] %v3164_v13  ;;  %4439 = vst [vmem:[#allocation68_spill] sm:$0xff] %v3168_v15  ;;  %v1368_v27 = vmul.f32 %v3168_v15, %v3164_v13 }
 0x11d   :  { %4438 = vst [vmem:[#allocation67_spill] sm:$0xff] %v3166_v14 }
 0x11e   :  { %v3153_v37 = vpop.permute.xlu1 %329  ;;  %v3155_v1 = vpop.permute.xlu0 %327 }
 0x11f   :  { %4435 = vst [vmem:[#allocation64_spill] sm:$0xff] %v3153_v37  ;;  %4436 = vst [vmem:[#allocation65_spill] sm:$0xff] %v3155_v1  ;;  %v3173_v37 = vld [vmem:[%s4292_s0 + $0xbc] sm:$0xff]  ;;  %v1367_v1 = vmul.f32 %v3168_v15, %v3166_v14 }
 0x120   :  { %822 = vrot.lane.b32.xlu1 %v798_v35, %s2349_s13  ;;  %820 = vrot.lane.b32.xlu0 %v797_v57, %s2349_s13  ;;  %4440 = vst [vmem:[#allocation69_spill] sm:$0xff] %v3173_v37  ;;  %v2173_v35 = vld [vmem:[%s4292_s0 + $0xb4] sm:$0xff]  ;;  %v3189_v59 = vunpack.c.l.bf16 %v3173_v37  ;;  %v3205_v37 = vunpack.c.l.bf16 %v2170_v63 }
 0x121   :  { %v3191_v7 = vunpack.c.h.bf16 %v2173_v35 }
 0x122   :  { %v3178_v57 = vpop.permute.xlu1 %888  ;;  %v3180_v48 = vpop.permute.xlu0 %886  ;;  %4443 = vst [vmem:[#allocation72_spill] sm:$0xff] %v3189_v59  ;;  %4448 = vst [vmem:[#allocation77_spill] sm:$0xff] %v3205_v37 }
 0x123   :  { %4441 = vst [vmem:[#allocation70_spill] sm:$0xff] %v3178_v57  ;;  %4442 = vst [vmem:[#allocation71_spill] sm:$0xff] %v3180_v48  ;;  %v3203_v48 = vunpack.c.l.bf16 %v2173_v35  ;;  %v1366_v35 = vmul.f32 %v3168_v15, %v3205_v37 }
 0x124   :  { %832 = vrot.lane.b32.xlu1 %v803_v41, %s2349_s13  ;;  %830 = vrot.lane.b32.xlu0 %v802_v51, %s2349_s13  ;;  %4444 = vst [vmem:[#allocation73_spill] sm:$0xff] %v3191_v7  ;;  %v1373_v51 = vmul.f32 %v3168_v15, %v3189_v59  ;;  %v1372_v41 = vmul.f32 %v3168_v15, %v3191_v7 }
 0x125   :  { %4447 = vst [vmem:[#allocation76_spill] sm:$0xff] %v3203_v48  ;;  %v1371_v63 = vmul.f32 %v3168_v15, %v3203_v48  ;;  %v3245_v15 = vmul.f32 %v3207_v2, %v2656_v21  ;;  %v4454_v21 = vld [vmem:[#allocation7_spill] sm:$0xff] }
 0x126   :  { %v3193_v55 = vpop.permute.xlu1 %898  ;;  %v3195_v57 = vpop.permute.xlu0 %896 }
 0x127   :  { %4445 = vst [vmem:[#allocation74_spill] sm:$0xff] %v3193_v55  ;;  %4446 = vst [vmem:[#allocation75_spill] sm:$0xff] %v3195_v57  ;;  %v141_v57 = vadd.f32 %v2678_v43, %v2442_v33 }
 0x128   :  { %1390 = vrot.lane.b32.xlu1 %v1368_v27, %s2348_s6  ;;  %1388 = vrot.lane.b32.xlu0 %v1367_v1, %s2348_s6  ;;  %v121_v27 = vsel %vm118_vm0, %v2660_v24, %v2670_v29  ;;  %v122_v1 = vsel %vm118_vm0, %v2670_v29, %v2678_v43  ;;  %v3231_v24 = vmul.f32 %v3207_v2, %v2627_v62  ;;  %v4455_v43 = vld [vmem:[#allocation8_spill] sm:$0xff] }
 0x129   :  { %v125_v29 = vsel %vm118_vm0, %v2686_v49, %v2700_v36  ;;  %v140_v49 = vadd.f32 %v122_v1, %v2439_v32  ;;  %v867_v32 = vmul.f32 %v2732_v10, %v3100_v5  ;;  %v4458_v1 = vld [vmem:[#allocation13_spill] sm:$0xff] }
 0x12a   :  { %v3209_v25 = vpop.permute.xlu1 %894  ;;  %v3211_v55 = vpop.permute.xlu0 %884  ;;  %v144_v33 = vadd.f32 %v125_v29, %v4454_v21  ;;  %v3293_v21 = vmul.f32 %v2791_v38, %v2859_v17  ;;  %v872_v17 = vmul.f32 %v2732_v10, %v3115_v8 }
 0x12b   :  { %4450 = vst [vmem:[#allocation79_spill] sm:$0xff] %v3209_v25  ;;  %4451 = vst [vmem:[#allocation80_spill] sm:$0xff] %v3211_v55  ;;  %v139_v25 = vadd.f32 %v121_v27, %v2436_v31  ;;  %v868_v31 = vmul.f32 %v2732_v10, %v3108_v34 }
 0x12c   :  { %1400 = vrot.lane.b32.xlu1 %v1373_v51, %s2348_s6  ;;  %1398 = vrot.lane.b32.xlu0 %v1372_v41, %s2348_s6  ;;  %v126_v51 = vsel %vm118_vm0, %v2700_v36, %v2698_v53  ;;  %v3241_v41 = vmul.f32 %v3207_v2, %v2648_v12  ;;  %v3257_v36 = vmul.f32 %v3207_v2, %v2658_v22  ;;  %v4460_v2 = vld [vmem:[#allocation15_spill] sm:$0xff] }
 0x12d   :  { %v146_v12 = vadd.f32 %v2698_v53, %v2453_v39  ;;  %v145_v27 = vadd.f32 %v126_v51, %v4455_v43  ;;  %v3271_v22 = vmul.f32 %v2791_v38, %v2812_v6  ;;  %v4456_v39 = vld [vmem:[#allocation9_spill] sm:$0xff]  ;;  %v3289_v6 = vmul.f32 %v2791_v38, %v2815_v44  ;;  %v4465_v43 = vld [vmem:[#allocation18_spill] sm:$0xff] }
 0x12e   :  { %v3247_v55 = vpop.permute.xlu1 %958  ;;  %v3249_v62 = vpop.permute.xlu0 %956  ;;  %v3275_v53 = vmul.f32 %v2791_v38, %v4456_v39  ;;  %v4466_v39 = vld [vmem:[#allocation16_spill] sm:$0xff]  ;;  %v873_v44 = vmul.f32 %v2732_v10, %v3123_v52 }
 0x12f   :  { %4452 = vst [vmem:[#allocation81_spill] sm:$0xff] %v3247_v55  ;;  %4453 = vst [vmem:[#allocation82_spill] sm:$0xff] %v3249_v62  ;;  %v193_v62 = vsel %vm189_vm1, %v4458_v1, %v4460_v2  ;;  %v4467_v55 = vld [vmem:[#allocation17_spill] sm:$0xff] }
 0x130   :  { %1396 = vrot.lane.b32.xlu1 %v1371_v63, %s2348_s6  ;;  %1386 = vrot.lane.b32.xlu0 %v1366_v35, %s2348_s6  ;;  %4457 = vst [vmem:[#allocation7_spill] sm:$0xff] %v3275_v53  ;;  %v4459_v63 = vld [vmem:[#allocation14_spill] sm:$0xff]  ;;  %4463 = vst [vmem:[#allocation13_spill] sm:$0xff] %v3289_v6 }
 0x131   :  { %v192_v35 = vsel %vm189_vm1, %v4459_v63, %v4458_v1  ;;  %4464 = vst [vmem:[#allocation14_spill] sm:$0xff] %v3293_v21  ;;  %v196_v63 = vsel %vm189_vm1, %v4466_v39, %v4465_v43  ;;  %v197_v1 = vsel %vm189_vm1, %v4465_v43, %v4467_v55  ;;  %v4468_v53 = vld [vmem:[#allocation10_spill] sm:$0xff]  ;;  %v3315_v39 = vstv %s3227_s24 }
 0x132   :  { %v3283_v29 = vpop.permute.xlu1 %968  ;;  %v3285_v51 = vpop.permute.xlu0 %966  ;;  %4471 = vst [vmem:[#allocation16_spill] sm:$0xff] %v3315_v39  ;;  %v3319_v43 = vmul.f32 %v2791_v38, %v2864_v16  ;;  %v3333_v21 = vadd.f32 %v196_v63, %v144_v33  ;;  %v3335_v10 = vadd.f32 %v197_v1, %v145_v27  ;;  %v1441_v33 = vmul.f32 %v3315_v39, %v3203_v48 }
 0x133   :  { %4461 = vst [vmem:[#allocation8_spill] sm:$0xff] %v3283_v29  ;;  %4462 = vst [vmem:[#allocation9_spill] sm:$0xff] %v3285_v51  ;;  %v3303_v29 = vmul.f32 %v2791_v38, %v4468_v53  ;;  %v3306_v51 = vstv %s3216_s23  ;;  %v3323_v53 = vadd.f32 %v192_v35, %v139_v25  ;;  %v1436_v27 = vmul.f32 %v3315_v39, %v3205_v37 }
 0x134   :  { %4470 = vst [vmem:[#allocation18_spill] sm:$0xff] %v3306_v51  ;;  %892 = vrot.lane.b32.xlu1 %v868_v31, %s2350_s14  ;;  %890 = vrot.lane.b32.xlu0 %v867_v32, %s2350_s14  ;;  %v3328_v31 = vadd.f32 %v4460_v2, %v141_v57  ;;  %v3331_v32 = vadd.f32 %v4467_v55, %v146_v12 }
 0x135   :  { %4469 = vst [vmem:[#allocation15_spill] sm:$0xff] %v3303_v29  ;;  %v3325_v29 = vadd.f32 %v193_v62, %v140_v49  ;;  %v3343_v16 = vmul.f32 %v3306_v51, %v2915_v54  ;;  %v3347_v25 = vmul.f32 %v3306_v51, %v2940_v4  ;;  %v444_v55 = vsel %vm118_vm0, %v2882_v20, %v2880_v58 }
 0x136   :  { %v3337_v6 = vpop.permute.xlu1 %964  ;;  %v3339_v38 = vpop.permute.xlu0 %954  ;;  %v1438_v2 = vmul.f32 %v3315_v39, %v3164_v13  ;;  %v1437_v57 = vmul.f32 %v3315_v39, %v3166_v14  ;;  %v3358_v62 = vmul.f32 %v3306_v51, %v2954_v40  ;;  %v448_v54 = vsel %vm118_vm0, %v2904_v3, %v2902_v50  ;;  %v4481_v51 = vld [vmem:[#allocation36_spill] sm:$0xff] }
 0x137   :  { %4472 = vst [vmem:[#allocation17_spill] sm:$0xff] %v3347_v25  ;;  %v1443_v4 = vmul.f32 %v3315_v39, %v3189_v59  ;;  %v1442_v49 = vmul.f32 %v3315_v39, %v3191_v7  ;;  %v447_v12 = vsel %vm118_vm0, %v2927_v61, %v2904_v3  ;;  %v443_v40 = vsel %vm118_vm0, %v2929_v60, %v2882_v20  ;;  %v4480_v25 = vld [vmem:[#allocation35_spill] sm:$0xff] }
 0x138   :  { %4473 = vst [vmem:[#allocation10_spill] sm:$0xff] %v3358_v62  ;;  %902 = vrot.lane.b32.xlu1 %v873_v44, %s2350_s14  ;;  %900 = vrot.lane.b32.xlu0 %v872_v17, %s2350_s14  ;;  %v462_v35 = vadd.f32 %v444_v55, %v2851_v47  ;;  %v514_v63 = vsel %vm189_vm1, %v2944_v45, %v2942_v26 }
 0x139   :  { %v3391_v20 = vmul.f32 %v2766_v56, %v3108_v34  ;;  %v3395_v60 = vmul.f32 %v2766_v56, %v3100_v5  ;;  %v467_v1 = vadd.f32 %v448_v54, %v2868_v0  ;;  %v518_v47 = vsel %vm189_vm1, %v2958_v19, %v2956_v9  ;;  %v4478_v34 = vld [vmem:[#allocation33_spill] sm:$0xff] }
 0x13a   :  { %v3385_v3 = vpop.permute.xlu1 %431  ;;  %v3387_v61 = vpop.permute.xlu0 %429  ;;  %v517_v44 = vsel %vm189_vm1, %v2966_v30, %v2958_v19  ;;  %v513_v17 = vsel %vm189_vm1, %v2968_v42, %v2944_v45  ;;  %v466_v55 = vadd.f32 %v447_v12, %v2884_v46  ;;  %v461_v39 = vadd.f32 %v443_v40, %v2886_v11  ;;  %v4475_v19 = vld [vmem:[#allocation30_spill] sm:$0xff]  ;;  %v4476_v45 = vld [vmem:[#allocation31_spill] sm:$0xff]  ;;  %v4477_v11 = vld [vmem:[#allocation32_spill] sm:$0xff] }
 0x13b   :  { %v584_v0 = vsel %vm260_vm2, %v2978_v23, %v2976_v28  ;;  %v3415_v54 = vstv %s3321_s25  ;;  %v532_v5 = vadd.f32 %v514_v63, %v462_v35  ;;  %v588_v30 = vsel %vm260_vm2, %v4475_v19, %v2988_v18 }
 0x13c   :  { %1460 = vrot.lane.b32.xlu1 %v1438_v2, %s2349_s13  ;;  %1458 = vrot.lane.b32.xlu0 %v1437_v57, %s2349_s13  ;;  %4474 = vst [vmem:[#allocation83_spill] sm:$0xff] %v3415_v54  ;;  %v587_v46 = vsel %vm260_vm2, %v4476_v45, %v4475_v19  ;;  %v583_v42 = vsel %vm260_vm2, %v4477_v11, %v2978_v23  ;;  %v4479_v57 = vld [vmem:[#allocation34_spill] sm:$0xff] }
 0x13d   :  { %v537_v12 = vadd.f32 %v518_v47, %v467_v1  ;;  %v536_v40 = vadd.f32 %v517_v44, %v466_v55  ;;  %v531_v2 = vadd.f32 %v513_v17, %v461_v39  ;;  %v654_v62 = vsel %vm331_vm3, %v4479_v57, %v4478_v34  ;;  %v2295_v19 = vld [vmem:[%s4293_s1 + $0x40] sm:$0xff]   ;;  %v4482_v39 = vld [vmem:[#allocation37_spill] sm:$0xff] }
 0x13e   :  { %v3429_v35 = vpop.permute.xlu1 %441  ;;  %v3431_v63 = vpop.permute.xlu0 %439  ;;  %v602_v45 = vadd.f32 %v584_v0, %v532_v5  ;;  %v658_v23 = vsel %vm331_vm3, %v4481_v51, %v4480_v25  ;;  %v657_v1 = vsel %vm331_vm3, %v4482_v39, %v4481_v51  ;;  %v4483_v47 = vld [vmem:[#allocation38_spill] sm:$0xff]  ;;  %v3452_v0 = vmul.f32 %v2766_v56, %v3123_v52  ;;  %2221 = vmatprep.subr.bf16.mxu0 %v2295_v19  ;;  %v4484_v19 = vld [vmem:[#allocation40_spill] sm:$0xff] }
 0x13f   :  { %v653_v44 = vsel %vm331_vm3, %v4483_v47, %v4479_v57  ;;  %v2296_v17 = vld [vmem:[%s4293_s1] sm:$0xff]   ;;  %v607_v55 = vadd.f32 %v588_v30, %v537_v12  ;;  %v606_v11 = vadd.f32 %v587_v46, %v536_v40  ;;  %v601_v34 = vadd.f32 %v583_v42, %v531_v2  ;;  %v2298_v2 = vld [vmem:[%s4293_s1 + $0x8] sm:$0xff]   ;;  %v4495_v25 = vld [vmem:[#allocation44_spill] sm:$0xff] }
 0x140   :  { %1470 = vrot.lane.b32.xlu1 %v1443_v4, %s2349_s13  ;;  %1468 = vrot.lane.b32.xlu0 %v1442_v49, %s2349_s13  ;;  %v672_v5 = vadd.f32 %v654_v62, %v602_v45  ;;  %v3456_v51 = vmul.f32 %v2766_v56, %v3115_v8  ;;  %v3459_v57 = vstv %s3379_s26  ;;  %v3467_v62 = vmul.f32 %v3415_v54, %v3164_v13  ;;  %v2297_v56 = vld [vmem:[%s4293_s1 + $0x48] sm:$0xff]   ;;  %v4485_v45 = vld [vmem:[#allocation41_spill] sm:$0xff] }
 0x141   :  { %v677_v39 = vadd.f32 %v658_v23, %v607_v55  ;;  %v676_v30 = vadd.f32 %v657_v1, %v606_v11  ;;  %v671_v46 = vadd.f32 %v653_v44, %v601_v34  ;;  %2222 = vmatpush3.bf16.msra.mxu0 %v2296_v17  ;;  %v3474_v49 = vmul.f32 %v3415_v54, %v3166_v14  ;;  %v4486_v17 = vld [vmem:[#allocation42_spill] sm:$0xff]  ;;  %v4487_v55 = vld [vmem:[#allocation43_spill] sm:$0xff] }
 0x142   :  { %v3461_v42 = vpop.permute.xlu1 %501  ;;  %v3463_v4 = vpop.permute.xlu0 %499  ;;  %v3478_v34 = vmul.f32 %v3415_v54, %v3189_v59  ;;  %v3482_v12 = vmul.f32 %v3415_v54, %v3191_v7  ;;  %v3486_v40 = vmul.f32 %v3415_v54, %v3203_v48  ;;  %v765_v23 = vsel %vm118_vm0, %v4485_v45, %v4484_v19  ;;  %2223 = vmatprep.subr.bf16.mxu0 %v2297_v56 }
 0x143   :  { %v3498_v1 = vmul.f32 %v3415_v54, %v3205_v37  ;;  %v3502_v47 = vmul.f32 %v3459_v57, %v3164_v13  ;;  %v713_v44 = vadd.f32 %v3231_v24, %v672_v5  ;;  %v769_v11 = vsel %vm118_vm0, %v4487_v55, %v4486_v17  ;;  %v4489_v24 = vld [vmem:[#allocation48_spill] sm:$0xff]  ;;  %v4490_v5 = vld [vmem:[#allocation19_spill] sm:$0xff] }
 0x144   :  { %1466 = vrot.lane.b32.xlu1 %v1441_v33, %s2349_s13  ;;  %1456 = vrot.lane.b32.xlu0 %v1436_v27, %s2349_s13  ;;  %v3510_v19 = vmul.f32 %v3459_v57, %v3166_v14  ;;  %v3514_v33 = vmul.f32 %v3459_v57, %v3189_v59  ;;  %v718_v27 = vadd.f32 %v3241_v41, %v677_v39  ;;  %v2299_v59 = vld [vmem:[%s4293_s1 + $0x50] sm:$0xff]   ;;  %v4491_v14 = vld [vmem:[#allocation47_spill] sm:$0xff]  ;;  %v4492_v41 = vld [vmem:[#allocation50_spill] sm:$0xff] }
 0x145   :  { %v717_v13 = vadd.f32 %v3245_v15, %v676_v30  ;;  %v712_v54 = vadd.f32 %v3257_v36, %v671_v46  ;;  %v263_v8 = vsel %vm260_vm2, %v4490_v5, %v4489_v24  ;;  %2224 = vmatpush3.bf16.msra.mxu0 %v2298_v2  ;;  %v783_v56 = vadd.f32 %v765_v23, %v713_v44  ;;  %v4493_v36 = vld [vmem:[#allocation20_spill] sm:$0xff]  ;;  %v4494_v30 = vld [vmem:[#allocation49_spill] sm:$0xff] }
 0x146   :  { %4488 = vst [vmem:[#allocation30_spill] sm:$0xff] %v3514_v33  ;;  %v3522_v17 = vpop.permute.xlu1 %511  ;;  %v3524_v52 = vpop.permute.xlu0 %509  ;;  %v264_v15 = vsel %vm260_vm2, %v4489_v24, %v4491_v14  ;;  %v267_v39 = vsel %vm260_vm2, %v4493_v36, %v4492_v41  ;;  %v268_v46 = vsel %vm260_vm2, %v4492_v41, %v4494_v30  ;;  %v2300_v2 = vld [vmem:[%s4293_s1 + $0x10] sm:$0xff]   ;;  %v788_v5 = vadd.f32 %v769_v11, %v718_v27  ;;  %v4496_v44 = vld [vmem:[#allocation45_spill] sm:$0xff]  ;;  %v4497_v11 = vld [vmem:[#allocation62_spill] sm:$0xff] }
 0x147   :  { %v768_v23 = vsel %vm118_vm0, %v4495_v25, %v4487_v55  ;;  %v764_v24 = vsel %vm118_vm0, %v4496_v44, %v4485_v45  ;;  %v283_v41 = vadd.f32 %v4491_v14, %v3328_v31  ;;  %v281_v36 = vadd.f32 %v263_v8, %v3323_v53  ;;  %v4498_v27 = vld [vmem:[#allocation21_spill] sm:$0xff]  ;;  %2225 = vmatprep.subr.bf16.mxu0 %v2299_v59  ;;  %v4500_v44 = vld [vmem:[#allocation51_spill] sm:$0xff]  ;;  %v4501_v59 = vld [vmem:[#allocation52_spill] sm:$0xff] }
 0x148   :  { %962 = vrot.lane.b32.xlu1 %v3391_v20, %s2351_s16  ;;  %960 = vrot.lane.b32.xlu0 %v3395_v60, %s2351_s16  ;;  %v334_v33 = vsel %vm331_vm3, %v4498_v27, %v4497_v11  ;;  %v4499_v25 = vld [vmem:[#allocation61_spill] sm:$0xff]  ;;  %v282_v45 = vadd.f32 %v264_v15, %v3325_v29  ;;  %v288_v20 = vadd.f32 %v4494_v30, %v3331_v32  ;;  %v4502_v15 = vld [vmem:[#allocation55_spill] sm:$0xff]  ;;  %v4506_v30 = vld [vmem:[#allocation64_spill] sm:$0xff] }
 0x149   :  { %v335_v55 = vsel %vm331_vm3, %v4497_v11, %v4499_v25  ;;  %v286_v60 = vadd.f32 %v267_v39, %v3333_v21  ;;  %v287_v14 = vadd.f32 %v268_v46, %v3335_v10  ;;  %2226 = vmatpush3.bf16.msra.mxu0 %v2300_v2  ;;  %v2301_v53 = vld [vmem:[%s4293_s1 + $0x58] sm:$0xff]   ;;  %v835_v29 = vsel %vm189_vm1, %v4501_v59, %v4500_v44  ;;  %v4503_v11 = vld [vmem:[#allocation56_spill] sm:$0xff]  ;;  %v4505_v39 = vld [vmem:[#allocation22_spill] sm:$0xff] }
 0x14a   :  { %v3565_v31 = vpop.permute.xlu1 %1069  ;;  %v3567_v8 = vpop.permute.xlu0 %1067  ;;  %v839_v32 = vsel %vm189_vm1, %v4503_v11, %v4502_v15  ;;  %v4504_v21 = vld [vmem:[#allocation65_spill] sm:$0xff]  ;;  %v354_v27 = vadd.f32 %v4499_v25, %v283_v41  ;;  %v352_v37 = vadd.f32 %v334_v33, %v281_v36  ;;  %v353_v44 = vadd.f32 %v335_v55, %v282_v45  ;;  %2227 = vmatprep.subr.bf16.mxu0 %v2301_v53  ;;  %v2304_v53 = vld [vmem:[%s4293_s1 + $0x20] sm:$0xff]  }
 0x14b   :  { %v338_v10 = vsel %vm331_vm3, %v4505_v39, %v4504_v21  ;;  %v339_v46 = vsel %vm331_vm3, %v4504_v21, %v4506_v30  ;;  %v2302_v2 = vld [vmem:[%s4293_s1 + $0x18] sm:$0xff]   ;;  %v3592_v15 = vadd.f32 %v768_v23, %v717_v13  ;;  %v3594_v39 = vadd.f32 %v764_v24, %v712_v54  ;;  %v2303_v13 = vld [vmem:[%s4293_s1 + $0x60] sm:$0xff]   ;;  %v4507_v54 = vld [vmem:[#allocation59_spill] sm:$0xff] }
 0x14c   :  { %972 = vrot.lane.b32.xlu1 %v3452_v0, %s2351_s16  ;;  %970 = vrot.lane.b32.xlu0 %v3456_v51, %s2351_s16  ;;  %v359_v21 = vadd.f32 %v4506_v30, %v288_v20  ;;  %v3599_v48 = vmul.f32 %v3459_v57, %v3191_v7  ;;  %v853_v41 = vadd.f32 %v835_v29, %v783_v56  ;;  %v4508_v23 = vld [vmem:[#allocation60_spill] sm:$0xff]  ;;  %v4510_v24 = vld [vmem:[#allocation71_spill] sm:$0xff]  ;;  %v4511_v20 = vld [vmem:[#allocation74_spill] sm:$0xff] }
 0x14d   :  { %v858_v33 = vadd.f32 %v839_v32, %v788_v5  ;;  %v357_v36 = vadd.f32 %v338_v10, %v286_v60  ;;  %v358_v25 = vadd.f32 %v339_v46, %v287_v14  ;;  %2228 = vmatpush3.bf16.msra.mxu0 %v2302_v2  ;;  %v838_v51 = vsel %vm189_vm1, %v4507_v54, %v4503_v11  ;;  %v4509_v5 = vld [vmem:[#allocation70_spill] sm:$0xff]  ;;  %v4512_v60 = vld [vmem:[#allocation75_spill] sm:$0xff]  ;;  %v4514_v10 = vld [vmem:[#allocation13_spill] sm:$0xff] }
 0x14e   :  { %v3601_v55 = vpop.permute.xlu1 %1079  ;;  %v3603_v0 = vpop.permute.xlu0 %1077  ;;  %v834_v56 = vsel %vm189_vm1, %v4508_v23, %v4501_v59  ;;  %v905_v45 = vsel %vm260_vm2, %v4510_v24, %v4509_v5  ;;  %v909_v14 = vsel %vm260_vm2, %v4512_v60, %v4511_v20  ;;  %v395_v29 = vadd.f32 %v3271_v22, %v354_v27  ;;  %v4513_v32 = vld [vmem:[#allocation7_spill] sm:$0xff]  ;;  %v4515_v59 = vld [vmem:[#allocation81_spill] sm:$0xff]  ;;  %v4516_v46 = vld [vmem:[#allocation82_spill] sm:$0xff]  ;;  %2229 = vmatprep.subr.bf16.mxu0 %v2303_v13 }
 0x14f   :  { %v393_v11 = vadd.f32 %v4513_v32, %v352_v37  ;;  %v394_v30 = vadd.f32 %v4514_v10, %v353_v44  ;;  %v975_v2 = vsel %vm331_vm3, %v4516_v46, %v4515_v59  ;;  %v445_v54 = vsel %vm118_vm0, %v2880_v58, %v3387_v61  ;;  %v4517_v22 = vld [vmem:[#allocation14_spill] sm:$0xff]  ;;  %v4518_v23 = vld [vmem:[#allocation15_spill] sm:$0xff] }
 0x150   :  { %1530 = vrot.lane.b32.xlu1 %v3467_v62, %s2350_s14  ;;  %1528 = vrot.lane.b32.xlu0 %v3474_v49, %s2350_s14  ;;  %v446_v37 = vsel %vm118_vm0, %v3387_v61, %v3385_v3  ;;  %v400_v44 = vadd.f32 %v4517_v22, %v359_v21  ;;  %v923_v27 = vadd.f32 %v905_v45, %v853_v41  ;;  %v2305_v58 = vld [vmem:[%s4293_s1 + $0x68] sm:$0xff]  }
 0x151   :  { %v928_v62 = vadd.f32 %v909_v14, %v858_v33  ;;  %v398_v32 = vadd.f32 %v4518_v23, %v357_v36  ;;  %v399_v49 = vadd.f32 %v3319_v43, %v358_v25  ;;  %2230 = vmatpush3.bf16.msra.mxu0 %v2304_v53  ;;  %v465_v61 = vadd.f32 %v3385_v3, %v395_v29  ;;  %v2306_v33 = vld [vmem:[%s4293_s1 + $0x28] sm:$0xff]   ;;  %v4520_v3 = vld [vmem:[#allocation9_spill] sm:$0xff] }
 0x152   :  { %v3642_v10 = vpop.permute.xlu1 %1075  ;;  %v3644_v7 = vpop.permute.xlu0 %1065  ;;  %v449_v21 = vsel %vm118_vm0, %v2902_v50, %v3431_v63  ;;  %v515_v41 = vsel %vm189_vm1, %v2942_v26, %v3463_v4  ;;  %v516_v43 = vsel %vm189_vm1, %v3463_v4, %v3461_v42  ;;  %v993_v36 = vadd.f32 %v975_v2, %v923_v27  ;;  %v4519_v50 = vld [vmem:[#allocation8_spill] sm:$0xff]  ;;  %2231 = vmatprep.subr.bf16.mxu0 %v2305_v58  ;;  %v4521_v27 = vld [vmem:[#allocation79_spill] sm:$0xff] }
 0x153   :  { %v463_v25 = vadd.f32 %v445_v54, %v393_v11  ;;  %v464_v13 = vadd.f32 %v446_v37, %v394_v30  ;;  %v979_v26 = vsel %vm331_vm3, %v4520_v3, %v4519_v50  ;;  %v470_v45 = vadd.f32 %v3429_v35, %v400_v44  ;;  %v2307_v2 = vld [vmem:[%s4293_s1 + $0x70] sm:$0xff]  }
 0x154   :  { %1540 = vrot.lane.b32.xlu1 %v3478_v34, %s2350_s14  ;;  %1538 = vrot.lane.b32.xlu0 %v3482_v12, %s2350_s14  ;;  %v450_v4 = vsel %vm118_vm0, %v3431_v63, %v3429_v35  ;;  %v535_v14 = vadd.f32 %v3461_v42, %v465_v61  ;;  %v468_v53 = vadd.f32 %v449_v21, %v398_v32 }
 0x155   :  { %v533_v29 = vadd.f32 %v515_v41, %v463_v25  ;;  %v534_v11 = vadd.f32 %v516_v43, %v464_v13  ;;  %v519_v34 = vsel %vm189_vm1, %v2956_v9, %v3524_v52  ;;  %2232 = vmatpush3.bf16.msra.mxu0 %v2306_v33  ;;  %v520_v35 = vsel %vm189_vm1, %v3524_v52, %v3522_v17  ;;  %v2308_v9 = vld [vmem:[%s4293_s1 + $0x30] sm:$0xff]  }
 0x156   :  { %v572_v12 = vpop.permute.xlu1 %571  ;;  %v570_v30 = vpop.permute.xlu0 %569  ;;  %v469_v37 = vadd.f32 %v450_v4, %v399_v49  ;;  %v857_v52 = vadd.f32 %v838_v51, %v3592_v15  ;;  %v908_v23 = vsel %vm260_vm2, %v4521_v27, %v4512_v60  ;;  %v540_v32 = vadd.f32 %v3522_v17, %v470_v45  ;;  %2233 = vmatprep.subr.bf16.mxu0 %v2307_v2  ;;  %v4522_v49 = vld [vmem:[#allocation80_spill] sm:$0xff]  ;;  %v2309_v15 = vld [vmem:[%s4293_s1 + $0x78] sm:$0xff]  }
 0x157   :  { %v3683_v63 = vadd.f32 %v572_v12, %v535_v14  ;;  %v585_v42 = vsel %vm260_vm2, %v2976_v28, %v570_v30  ;;  %v586_v54 = vsel %vm260_vm2, %v570_v30, %v572_v12  ;;  %v852_v28 = vadd.f32 %v834_v56, %v3594_v39  ;;  %v2310_v60 = vld [vmem:[%s4293_s1 + $0x38] sm:$0xff]   ;;  %v4524_v45 = vld [vmem:[#allocation28_spill] sm:$0xff] }
 0x158   :  { %v3691_v22 = vadd.f32 %v585_v42, %v533_v29  ;;  %v3693_v44 = vadd.f32 %v586_v54, %v534_v11  ;;  %1536 = vrot.lane.b32.xlu1 %v3486_v40, %s2350_s14  ;;  %1526 = vrot.lane.b32.xlu0 %v3498_v1, %s2350_s14  ;;  %v904_v58 = vsel %vm260_vm2, %v4522_v49, %v4510_v24  ;;  %v2161_v24 = vld [vmem:[%s4292_s0 + $0x88] ss:$20 sps:$4 sm:$0xff]   ;;  %v4526_v4 = vld [vmem:[#allocation76_spill] sm:$0xff]  ;;  %v4529_v54 = vld [vmem:[#allocation30_spill] sm:$0xff] }
 0x159   :  { %v998_v61 = vadd.f32 %v979_v26, %v928_v62  ;;  %v538_v40 = vadd.f32 %v519_v34, %v468_v53  ;;  %v539_v21 = vadd.f32 %v520_v35, %v469_v37  ;;  %2234 = vmatpush3.bf16.msra.mxu0 %v2308_v9  ;;  %v1086_v39 = vsel %vm118_vm0, %v3567_v8, %v3565_v31  ;;  %v4523_v62 = vld [vmem:[#allocation23_spill] sm:$0xff]  ;;  %v4528_v12 = vld [vmem:[#allocation77_spill] sm:$0xff] }
 0x15a   :  { %v582_v41 = vpop.permute.xlu1 %581  ;;  %v580_v1 = vpop.permute.xlu0 %579  ;;  %v3726_v43 = vunpack.c.h.bf16 %v4523_v62  ;;  %v1034_v33 = vadd.f32 %v3343_v16, %v993_v36  ;;  %v974_v26 = vsel %vm331_vm3, %v3339_v38, %v4516_v46  ;;  %v4525_v16 = vld [vmem:[#allocation18_spill] sm:$0xff]  ;;  %v1581_v14 = vmul.f32 %v3459_v57, %v4526_v4  ;;  %2235 = vmatprep.subr.bf16.mxu0 %v2309_v15 }
 0x15b   :  { %v3714_v17 = vadd.f32 %v582_v41, %v540_v32  ;;  %v589_v51 = vsel %vm260_vm2, %v2988_v18, %v580_v1  ;;  %v590_v56 = vsel %vm260_vm2, %v580_v1, %v582_v41  ;;  %v978_v18 = vsel %vm331_vm3, %v3337_v6, %v4520_v3  ;;  %v4527_v6 = vld [vmem:[#allocation17_spill] sm:$0xff]  ;;  %v4532_v1 = vld [vmem:[#allocation26_spill] sm:$0xff] }
 0x15c   :  { %v3729_v25 = vadd.f32 %v589_v51, %v538_v40  ;;  %v3731_v13 = vadd.f32 %v590_v56, %v539_v21  ;;  %1600 = vrot.lane.b32.xlu1 %v3502_v47, %s2351_s16  ;;  %1598 = vrot.lane.b32.xlu0 %v3510_v19, %s2351_s16  ;;  %v1023_v36 = vmul.f32 %v4525_v16, %v4524_v45  ;;  %v3749_v34 = vunpack.c.l.bf16 %v2161_v24  ;;  %v4533_v45 = vld [vmem:[#allocation33_spill] sm:$0xff] }
 0x15d   :  { %v927_v53 = vadd.f32 %v908_v23, %v857_v52  ;;  %v922_v47 = vadd.f32 %v904_v58, %v852_v28  ;;  %v1104_v29 = vadd.f32 %v1086_v39, %v1034_v33  ;;  %2236 = vmatpush3.bf16.msra.mxu0 %v2310_v60  ;;  %v1039_v3 = vadd.f32 %v4527_v6, %v998_v61  ;;  %v4530_v28 = vld [vmem:[#allocation25_spill] sm:$0xff]  ;;  %v4531_v61 = vld [vmem:[#allocation10_spill] sm:$0xff] }
 0x15e   :  { %v3747_v11 = vpop.permute.xlu1 %1139  ;;  %v1138_v19 = vpop.permute.xlu0 %1137  ;;  %v1090_v38 = vsel %vm118_vm0, %v3603_v0, %v3601_v55  ;;  %v1576_v30 = vmul.f32 %v3459_v57, %v4528_v12  ;;  %v1049_v27 = vmul.f32 %v4530_v28, %v3749_v34  ;;  %v1048_v23 = vmul.f32 %v4530_v28, %v3726_v43 }
 0x15f   :  { %v1156_v46 = vsel %vm189_vm1, %v1138_v19, %v3747_v11  ;;  %v997_v2 = vadd.f32 %v978_v18, %v927_v53  ;;  %v992_v35 = vadd.f32 %v974_v26, %v922_v47  ;;  %v1109_v9 = vadd.f32 %v1090_v38, %v1039_v3  ;;  %v4534_v53 = vld [vmem:[#allocation29_spill] sm:$0xff] }
 0x160   :  { %v1174_v42 = vadd.f32 %v1156_v46, %v1104_v29  ;;  %1610 = vrot.lane.b32.xlu1 %v4529_v54, %s2351_s16  ;;  %1608 = vrot.lane.b32.xlu0 %v3599_v48, %s2351_s16  ;;  %v1089_v32 = vsel %vm118_vm0, %v3642_v10, %v3603_v0  ;;  %v1085_v49 = vsel %vm118_vm0, %v3644_v7, %v3567_v8  ;;  %v3777_v58 = vunpack.c.h.bf16 %v2161_v24  ;;  %v4535_v46 = vld [vmem:[#allocation35_spill] sm:$0xff] }
 0x161   :  { %v1038_v40 = vadd.f32 %v4531_v61, %v997_v2  ;;  %v1033_v21 = vadd.f32 %v1023_v36, %v992_v35  ;;  %v3783_v15 = vunpack.c.h.bf16 %v4532_v1  ;;  %v1119_v47 = vmul.f32 %v4534_v53, %v3749_v34 }
 0x162   :  { %v3763_v37 = vpop.permute.xlu1 %1149  ;;  %v1148_v52 = vpop.permute.xlu0 %1147  ;;  %v1054_v56 = vmul.f32 %v4530_v28, %v3777_v58 }
 0x163   :  { %v1160_v48 = vsel %vm189_vm1, %v1148_v52, %v3763_v37  ;;  %v1108_v0 = vadd.f32 %v1089_v32, %v1038_v40  ;;  %v1103_v10 = vadd.f32 %v1085_v49, %v1033_v21  ;;  %v1053_v62 = vmul.f32 %v4530_v28, %v3783_v15 }
 0x164   :  { %v1179_v41 = vadd.f32 %v1160_v48, %v1109_v9  ;;  %1606 = vrot.lane.b32.xlu1 %v1581_v14, %s2351_s16  ;;  %1596 = vrot.lane.b32.xlu0 %v1576_v30, %s2351_s16 }
 0x166   :  { %v1146_v39 = vpop.permute.xlu1 %1145  ;;  %v1136_v7 = vpop.permute.xlu0 %1135 }
 0x167   :  { %v1159_v8 = vsel %vm189_vm1, %v1146_v39, %v1148_v52  ;;  %v1155_v51 = vsel %vm189_vm1, %v1136_v7, %v1138_v19 }
 0x168   :  { %v1178_v24 = vadd.f32 %v1159_v8, %v1108_v0  ;;  %v1173_v60 = vadd.f32 %v1155_v51, %v1103_v10  ;;  %1073 = vrot.lane.b32.xlu1 %v1049_v27, %s2348_s6  ;;  %1071 = vrot.lane.b32.xlu0 %v1048_v23, %s2348_s6  ;;  %v4537_v10 = vld [vmem:[#allocation46_spill] sm:$0xff] }
 0x169   :  { %v1259_v39 = vmul.f32 %v4537_v10, %v3749_v34  ;;  %v1258_v8 = vmul.f32 %v4537_v10, %v3726_v43  ;;  %v2172_v51 = vld [vmem:[%s4292_s0 + $0xb0] ss:$20 sps:$4 sm:$0xff]  }
 0x16a   :  { %v642_v33 = vpop.permute.xlu1 %641  ;;  %v640_v18 = vpop.permute.xlu0 %639 }
 0x16b   :  { %v3794_v26 = vadd.f32 %v642_v33, %v3683_v63  ;;  %v655_v36 = vsel %vm331_vm3, %v4533_v45, %v640_v18  ;;  %v656_v14 = vsel %vm331_vm3, %v640_v18, %v642_v33  ;;  %v1118_v63 = vmul.f32 %v4534_v53, %v3726_v43 }
 0x16c   :  { %v3802_v29 = vadd.f32 %v655_v36, %v3691_v22  ;;  %v3805_v19 = vadd.f32 %v656_v14, %v3693_v44  ;;  %1083 = vrot.lane.b32.xlu1 %v1054_v56, %s2348_s6  ;;  %1081 = vrot.lane.b32.xlu0 %v1053_v62, %s2348_s6  ;;  %v1124_v44 = vmul.f32 %v4534_v53, %v3777_v58  ;;  %v3875_v36 = vunpack.c.l.bf16 %v2172_v51  ;;  %v4538_v14 = vld [vmem:[#allocation63_spill] sm:$0xff] }
 0x16d   :  { %v1263_v45 = vmul.f32 %v4537_v10, %v3783_v15 }
 0x16e   :  { %v652_v6 = vpop.permute.xlu1 %651  ;;  %v650_v3 = vpop.permute.xlu0 %649 }
 0x16f   :  { %v3812_v38 = vadd.f32 %v652_v6, %v3714_v17  ;;  %v659_v30 = vsel %vm331_vm3, %v4535_v46, %v650_v3  ;;  %v660_v22 = vsel %vm331_vm3, %v650_v3, %v652_v6  ;;  %v1123_v17 = vmul.f32 %v4534_v53, %v3783_v15 }
 0x170   :  { %v3820_v2 = vadd.f32 %v659_v30, %v3729_v25  ;;  %v3823_v35 = vadd.f32 %v660_v22, %v3731_v13  ;;  %1143 = vrot.lane.b32.xlu1 %v1119_v47, %s2349_s13  ;;  %1141 = vrot.lane.b32.xlu0 %v1118_v63, %s2349_s13  ;;  %v4536_v25 = vld [vmem:[#allocation39_spill] sm:$0xff]  ;;  %v3878_v53 = vunpack.c.h.bf16 %v4538_v14  ;;  %v2312_v47 = vld [vmem:[%s4293_s1 + $0x80] sm:$0xff]   ;;  %v3887_v46 = vunpack.c.h.bf16 %v2172_v51 }
 0x171   :  { %v1189_v13 = vmul.f32 %v4536_v25, %v3749_v34  ;;  %v1188_v27 = vmul.f32 %v4536_v25, %v3726_v43  ;;  %v1193_v61 = vmul.f32 %v4536_v25, %v3783_v15  ;;  %v2313_v30 = vld [vmem:[%s4293_s1 + $0xc8] sm:$0xff]  }
 0x172   :  { %v3829_v54 = vpop.permute.xlu1 %1209  ;;  %v1208_v9 = vpop.permute.xlu0 %1207 }
 0x173   :  { %v1226_v52 = vsel %vm260_vm2, %v1208_v9, %v3829_v54 }
 0x174   :  { %v1244_v28 = vadd.f32 %v1226_v52, %v1174_v42  ;;  %1153 = vrot.lane.b32.xlu1 %v1124_v44, %s2349_s13  ;;  %1151 = vrot.lane.b32.xlu0 %v1123_v17, %s2349_s13  ;;  %v1194_v42 = vmul.f32 %v4536_v25, %v3777_v58  ;;  %v4539_v44 = vld [vmem:[#allocation68_spill] sm:$0xff]  ;;  %v4540_v52 = vld [vmem:[#allocation69_spill] sm:$0xff]  ;;  %v2314_v25 = vld [vmem:[%s4293_s1 + $0x88] sm:$0xff]  }
 0x175   :  { %v1370_v17 = vmul.f32 %v4539_v44, %v3875_v36 }
 0x176   :  { %v3839_v23 = vpop.permute.xlu1 %1219  ;;  %v1218_v32 = vpop.permute.xlu0 %1217 }
 0x177   :  { %v1230_v49 = vsel %vm260_vm2, %v1218_v32, %v3839_v23 }
 0x178   :  { %v1249_v48 = vadd.f32 %v1230_v49, %v1179_v41  ;;  %1213 = vrot.lane.b32.xlu1 %v1189_v13, %s2350_s14  ;;  %1211 = vrot.lane.b32.xlu0 %v1188_v27, %s2350_s14  ;;  %v4541_v13 = vld [vmem:[#allocation54_spill] sm:$0xff] }
 0x179   :  { %v4542_v27 = vld [vmem:[#allocation78_spill] sm:$0xff] }
 0x17a   :  { %v1216_v40 = vpop.permute.xlu1 %1215  ;;  %v1206_v21 = vpop.permute.xlu0 %1205 }
 0x17b   :  { %v1229_v1 = vsel %vm260_vm2, %v1216_v40, %v1218_v32  ;;  %v1225_v0 = vsel %vm260_vm2, %v1206_v21, %v1208_v9  ;;  %v1369_v9 = vmul.f32 %v4539_v44, %v3878_v53  ;;  %v706_v32 = vmul.f32 %v4542_v27, %v4541_v13  ;;  %v4544_v40 = vld [vmem:[#allocation53_spill] sm:$0xff] }
 0x17c   :  { %v1248_v41 = vadd.f32 %v1229_v1, %v1178_v24  ;;  %v1243_v7 = vadd.f32 %v1225_v0, %v1173_v60  ;;  %1223 = vrot.lane.b32.xlu1 %v1194_v42, %s2350_s14  ;;  %1221 = vrot.lane.b32.xlu0 %v1193_v61, %s2350_s14  ;;  %v1264_v24 = vmul.f32 %v4537_v10, %v3777_v58  ;;  %v2311_v60 = vld [vmem:[%s4293_s1 + $0xc0] sm:$0xff]   ;;  %v4543_v42 = vld [vmem:[#allocation11_spill] sm:$0xff] }
 0x17d   :  { %2243 = vmatprep.subr.bf16.mxu1 %v2311_v60  ;;  %v704_v61 = vmul.f32 %v4542_v27, %v4543_v42  ;;  %v705_v21 = vmul.f32 %v4542_v27, %v4544_v40  ;;  %v1375_v10 = vmul.f32 %v4539_v44, %v3887_v46  ;;  %v4545_v60 = vld [vmem:[#allocation58_spill] sm:$0xff] }
 0x17e   :  { %v3860_v56 = vpop.permute.xlu1 %1279  ;;  %v1278_v62 = vpop.permute.xlu0 %1277  ;;  %2244 = vmatpush3.bf16.msra.mxu1 %v2312_v47 }
 0x17f   :  { %v1296_v33 = vsel %vm331_vm3, %v1278_v62, %v3860_v56  ;;  %2245 = vmatprep.subr.bf16.mxu1 %v2313_v30  ;;  %v715_v14 = vadd.f32 %v705_v21, %v3805_v19  ;;  %v4547_v30 = vld [vmem:[#allocation57_spill] sm:$0xff] }
 0x180   :  { %v3869_v18 = vadd.f32 %v1296_v33, %v1244_v28  ;;  %1283 = vrot.lane.b32.xlu1 %v1259_v39, %s2351_s16  ;;  %1281 = vrot.lane.b32.xlu0 %v1258_v8, %s2351_s16  ;;  %v3901_v28 = vunpack.c.h.bf16 %v4540_v52  ;;  %v2316_v39 = vld [vmem:[%s4293_s1 + $0xd0] sm:$0xff]  }
 0x182   :  { %v3883_v63 = vpop.permute.xlu1 %1289  ;;  %v1288_v6 = vpop.permute.xlu0 %1287  ;;  %2246 = vmatpush3.bf16.msra.mxu1 %v2314_v25  ;;  %v1374_v33 = vmul.f32 %v4539_v44, %v3901_v28  ;;  %v710_v44 = vmul.f32 %v4542_v27, %v4547_v30  ;;  %v4549_v25 = vld [vmem:[#allocation16_spill] sm:$0xff] }
 0x183   :  { %v1300_v3 = vsel %vm331_vm3, %v1288_v6, %v3883_v63  ;;  %2247 = vmatprep.subr.bf16.mxu1 %v2316_v39  ;;  %v1440_v13 = vmul.f32 %v4549_v25, %v3875_v36 }
 0x184   :  { %v3892_v22 = vadd.f32 %v1300_v3, %v1249_v48  ;;  %1293 = vrot.lane.b32.xlu1 %v1264_v24, %s2351_s16  ;;  %1291 = vrot.lane.b32.xlu0 %v1263_v45, %s2351_s16  ;;  %v716_v24 = vadd.f32 %v706_v32, %v3794_v26  ;;  %v711_v45 = vmul.f32 %v4542_v27, %v4545_v60  ;;  %v2323_v60 = vld [vmem:[%s4293_s1 + $0xa0] sm:$0xff]  }
 0x185   :  { %v720_v40 = vadd.f32 %v710_v44, %v3823_v35  ;;  %v2325_v44 = vld [vmem:[%s4293_s1 + $0xe8] sm:$0xff]  }
 0x186   :  { %v1286_v49 = vpop.permute.xlu1 %1285  ;;  %v1276_v48 = vpop.permute.xlu0 %1275 }
 0x187   :  { %v1299_v1 = vsel %vm331_vm3, %v1286_v49, %v1288_v6  ;;  %v1295_v0 = vsel %vm331_vm3, %v1276_v48, %v1278_v62  ;;  %v2317_v62 = vld [vmem:[%s4293_s1 + $0x90] sm:$0xff]   ;;  %v2320_v49 = vld [vmem:[%s4293_s1 + $0x98] sm:$0xff]   ;;  %v721_v48 = vadd.f32 %v711_v45, %v3812_v38  ;;  %v2322_v38 = vld [vmem:[%s4293_s1 + $0xe0] sm:$0xff]  }
 0x188   :  { %v3919_v8 = vadd.f32 %v1299_v1, %v1248_v41  ;;  %v3921_v51 = vadd.f32 %v1295_v0, %v1243_v7  ;;  %1394 = vrot.lane.b32.xlu1 %v1370_v17, %s2348_s6  ;;  %1392 = vrot.lane.b32.xlu0 %v1369_v9, %s2348_s6  ;;  %v714_v7 = vadd.f32 %v704_v61, %v3802_v29  ;;  %v4546_v6 = vld [vmem:[#allocation12_spill] sm:$0xff]  ;;  %v2319_v29 = vld [vmem:[%s4293_s1 + $0xd8] sm:$0xff]   ;;  %v4550_v0 = vld [vmem:[#allocation42_spill] sm:$0xff] }
 0x189   :  { %v709_v3 = vmul.f32 %v4542_v27, %v4546_v6  ;;  %2248 = vmatpush3.bf16.msra.mxu1 %v2317_v62  ;;  %v4548_v9 = vld [vmem:[#allocation40_spill] sm:$0xff]  ;;  %v1439_v27 = vmul.f32 %v4549_v25, %v3878_v53  ;;  %v2352_v62 = vmov 0.0  }
 0x18a   :  { %v753_v41 = vpop.permute.xlu1 %752  ;;  %v751_v47 = vpop.permute.xlu0 %750  ;;  %2249 = vmatprep.subr.bf16.mxu1 %v2319_v29  ;;  %2272 = vmatprep.subr.bf16.mxu0 %v2352_v62 }
 0x18b   :  { %v786_v17 = vadd.f32 %v753_v41, %v716_v24  ;;  %v766_v26 = vsel %vm118_vm0, %v4548_v9, %v751_v47  ;;  %v767_v52 = vsel %vm118_vm0, %v751_v47, %v753_v41  ;;  %v719_v61 = vadd.f32 %v709_v3, %v3820_v2  ;;  %v4552_v3 = vld [vmem:[#allocation83_spill] sm:$0xff] }
 0x18c   :  { %v784_v19 = vadd.f32 %v766_v26, %v714_v7  ;;  %v785_v32 = vadd.f32 %v767_v52, %v715_v14  ;;  %1404 = vrot.lane.b32.xlu1 %v1375_v10, %s2348_s6  ;;  %1402 = vrot.lane.b32.xlu0 %v1374_v33, %s2348_s6  ;;  %v1445_v33 = vmul.f32 %v4549_v25, %v3887_v46  ;;  %v4551_v14 = vld [vmem:[#allocation51_spill] sm:$0xff] }
 0x18d   :  { %2250 = vmatpush3.bf16.msra.mxu1 %v2320_v49  ;;  %v1444_v24 = vmul.f32 %v4549_v25, %v3901_v28  ;;  %v1510_v30 = vmul.f32 %v4552_v3, %v3875_v36  ;;  %v2326_v52 = vld [vmem:[%s4293_s1 + $0xa8] sm:$0xff]   ;;  %v1515_v49 = vmul.f32 %v4552_v3, %v3887_v46 }
 0x18e   :  { %v763_v42 = vpop.permute.xlu1 %762  ;;  %v761_v21 = vpop.permute.xlu0 %760  ;;  %2251 = vmatprep.subr.bf16.mxu1 %v2322_v38  ;;  %v2332_v38 = vld [vmem:[%s4293_s1 + $0xb8] sm:$0xff]  }
 0x18f   :  { %v791_v1 = vadd.f32 %v763_v42, %v721_v48  ;;  %v770_v10 = vsel %vm118_vm0, %v4550_v0, %v761_v21  ;;  %v771_v39 = vsel %vm118_vm0, %v761_v21, %v763_v42  ;;  %v2328_v48 = vld [vmem:[%s4293_s1 + $0xf0] sm:$0xff]  }
 0x190   :  { %v789_v2 = vadd.f32 %v770_v10, %v719_v61  ;;  %v790_v35 = vadd.f32 %v771_v39, %v720_v40  ;;  %1464 = vrot.lane.b32.xlu1 %v1440_v13, %s2349_s13  ;;  %1462 = vrot.lane.b32.xlu0 %v1439_v27, %s2349_s13  ;;  %v4553_v27 = vld [vmem:[#allocation55_spill] sm:$0xff]  ;;  %v1514_v40 = vmul.f32 %v4552_v3, %v3901_v28  ;;  %v2329_v21 = vld [vmem:[%s4293_s1 + $0xb0] sm:$0xff]   ;;  %v2331_v10 = vld [vmem:[%s4293_s1 + $0xf8] sm:$0xff]  }
 0x191   :  { %2252 = vmatpush3.bf16.msra.mxu1 %v2323_v60  ;;  %v1580_v39 = vmul.f32 %v3459_v57, %v3875_v36  ;;  %v1584_v60 = vmul.f32 %v3459_v57, %v3901_v28 }
 0x192   :  { %v823_v45 = vpop.permute.xlu1 %822  ;;  %v821_v41 = vpop.permute.xlu0 %820  ;;  %2253 = vmatprep.subr.bf16.mxu1 %v2325_v44 }
 0x193   :  { %v856_v7 = vadd.f32 %v823_v45, %v786_v17  ;;  %v836_v47 = vsel %vm189_vm1, %v4551_v14, %v821_v41  ;;  %v837_v6 = vsel %vm189_vm1, %v821_v41, %v823_v45  ;;  %v1509_v17 = vmul.f32 %v4552_v3, %v3878_v53 }
 0x194   :  { %v854_v9 = vadd.f32 %v836_v47, %v784_v19  ;;  %v855_v26 = vadd.f32 %v837_v6, %v785_v32  ;;  %1474 = vrot.lane.b32.xlu1 %v1445_v33, %s2349_s13  ;;  %1472 = vrot.lane.b32.xlu0 %v1444_v24, %s2349_s13  ;;  %v1579_v33 = vmul.f32 %v3459_v57, %v3878_v53 }
 0x195   :  { %2254 = vmatpush3.bf16.msra.mxu1 %v2326_v52  ;;  %v1585_v24 = vmul.f32 %v3459_v57, %v3887_v46 }
 0x196   :  { %v833_v25 = vpop.permute.xlu1 %832  ;;  %v831_v13 = vpop.permute.xlu0 %830  ;;  %2255 = vmatprep.subr.bf16.mxu1 %v2328_v48 }
 0x197   :  { %v861_v29 = vadd.f32 %v833_v25, %v791_v1  ;;  %v840_v19 = vsel %vm189_vm1, %v4553_v27, %v831_v13  ;;  %v841_v32 = vsel %vm189_vm1, %v831_v13, %v833_v25 }
 0x198   :  { %v859_v42 = vadd.f32 %v840_v19, %v789_v2  ;;  %v860_v61 = vadd.f32 %v841_v32, %v790_v35  ;;  %1534 = vrot.lane.b32.xlu1 %v1510_v30, %s2350_s14  ;;  %1532 = vrot.lane.b32.xlu0 %v1509_v17, %s2350_s14 }
 0x199   :  { %2256 = vmatpush3.bf16.msra.mxu1 %v2329_v21 }
 0x19a   :  { %v4003_v1 = vpop.permute.xlu1 %1390  ;;  %v4005_v0 = vpop.permute.xlu0 %1388  ;;  %2257 = vmatprep.subr.bf16.mxu1 %v2331_v10 }
 0x19c   :  { %1544 = vrot.lane.b32.xlu1 %v1515_v49, %s2350_s14  ;;  %1542 = vrot.lane.b32.xlu0 %v1514_v40, %s2350_s14  ;;  %s2176_s14 = sld [smem:[#allocation4 + $0x4]] }
 0x19d   :  { %2258 = vmatpush3.bf16.msra.mxu1 %v2332_v38 }
 0x19e   :  { %v4019_v2 = vpop.permute.xlu1 %1400  ;;  %v4021_v35 = vpop.permute.xlu0 %1398 }
 0x1a0   :  { %1604 = vrot.lane.b32.xlu1 %v1580_v39, %s2351_s16  ;;  %1602 = vrot.lane.b32.xlu0 %v1579_v33, %s2351_s16 }
 0x1a2   :  { %v4029_v45 = vpop.permute.xlu1 %1396  ;;  %v4031_v41 = vpop.permute.xlu0 %1386 }
 0x1a4   :  { %1614 = vrot.lane.b32.xlu1 %v1585_v24, %s2351_s16  ;;  %1612 = vrot.lane.b32.xlu0 %v1584_v60, %s2351_s16 }
 0x1a6   :  { %v893_v14 = vpop.permute.xlu1 %892  ;;  %v891_v47 = vpop.permute.xlu0 %890 }
 0x1a7   :  { %v926_v6 = vadd.f32 %v893_v14, %v856_v7  ;;  %v906_v3 = vsel %vm260_vm2, %v4509_v5, %v891_v47  ;;  %v907_v30 = vsel %vm260_vm2, %v891_v47, %v893_v14 }
 0x1a8   :  { %v924_v44 = vadd.f32 %v906_v3, %v854_v9  ;;  %v925_v17 = vadd.f32 %v907_v30, %v855_v26  ;;  %v4554_v30 = vld [vmem:[#allocation67_spill] sm:$0xff] }
 0x1aa   :  { %v903_v52 = vpop.permute.xlu1 %902  ;;  %v901_v57 = vpop.permute.xlu0 %900 }
 0x1ab   :  { %v931_v25 = vadd.f32 %v903_v52, %v861_v29  ;;  %v910_v13 = vsel %vm260_vm2, %v4511_v20, %v901_v57  ;;  %v911_v27 = vsel %vm260_vm2, %v901_v57, %v903_v52 }
 0x1ac   :  { %v929_v19 = vadd.f32 %v910_v13, %v859_v42  ;;  %v930_v32 = vadd.f32 %v911_v27, %v860_v61 }
 0x1ae   :  { %v4041_v49 = vpop.permute.xlu1 %1460  ;;  %v1459_v7 = vpop.permute.xlu0 %1458 }
 0x1af   :  { %v1477_v27 = vsel %vm189_vm1, %v1459_v7, %v4041_v49 }
 0x1b2   :  { %v4043_v48 = vpop.permute.xlu1 %1470  ;;  %v1469_v5 = vpop.permute.xlu0 %1468 }
 0x1b6   :  { %v1467_v40 = vpop.permute.xlu1 %1466  ;;  %v1457_v21 = vpop.permute.xlu0 %1456 }
 0x1ba   :  { %v963_v9 = vpop.permute.xlu1 %962  ;;  %v961_v26 = vpop.permute.xlu0 %960 }
 0x1bb   :  { %v4045_v10 = vadd.f32 %v963_v9, %v926_v6  ;;  %v976_v20 = vsel %vm331_vm3, %v4515_v59, %v961_v26  ;;  %v977_v29 = vsel %vm331_vm3, %v961_v26, %v963_v9  ;;  %v4063_v59 = vstv %s2176_s14 }
 0x1bc   :  { %v4050_v42 = vadd.f32 %v976_v20, %v924_v44  ;;  %v4052_v61 = vadd.f32 %v977_v29, %v925_v17  ;;  %v1345_v44 = vmul.f32 %v4063_v59, %v4554_v30  ;;  %v1411_v26 = vsel %vm118_vm0, %v4021_v35, %v4019_v2 }
 0x1be   :  { %v973_v39 = vpop.permute.xlu1 %972  ;;  %v971_v33 = vpop.permute.xlu0 %970  ;;  %v1355_v57 = vadd.f32 %v1345_v44, %v3869_v18  ;;  %v1349_v18 = vmul.f32 %v4063_v59, %v4526_v4  ;;  %v1406_v4 = vsel %vm118_vm0, %v4031_v41, %v4005_v0 }
 0x1bf   :  { %v4054_v38 = vadd.f32 %v973_v39, %v931_v25  ;;  %v980_v24 = vsel %vm331_vm3, %v4519_v50, %v971_v33  ;;  %v981_v60 = vsel %vm331_vm3, %v971_v33, %v973_v39  ;;  %v1407_v50 = vsel %vm118_vm0, %v4005_v0, %v4003_v1  ;;  %v4555_v25 = vld [vmem:[#allocation73_spill] sm:$0xff] }
 0x1c0   :  { %v4059_v14 = vadd.f32 %v980_v24, %v929_v19  ;;  %v4061_v47 = vadd.f32 %v981_v60, %v930_v32  ;;  %v1350_v13 = vmul.f32 %v4063_v59, %v4555_v25  ;;  %v1425_v19 = vadd.f32 %v1407_v50, %v1355_v57 }
 0x1c1   :  { %v1344_v39 = vmul.f32 %v4063_v59, %v4528_v12  ;;  %v1481_v24 = vsel %vm189_vm1, %v1469_v5, %v4043_v48  ;;  %v1410_v57 = vsel %vm118_vm0, %v4029_v45, %v4021_v35  ;;  %v1359_v25 = vadd.f32 %v1349_v18, %v3919_v8 }
 0x1c2   :  { %v4065_v6 = vpop.permute.xlu1 %1530  ;;  %v1529_v3 = vpop.permute.xlu0 %1528  ;;  %v1360_v29 = vadd.f32 %v1350_v13, %v3892_v22  ;;  %v1495_v33 = vadd.f32 %v1477_v27, %v1425_v19  ;;  %v1476_v35 = vsel %vm189_vm1, %v1457_v21, %v1459_v7  ;;  %v4110_v0 = vstv %s4296_s4 }
 0x1c3   :  { %v1547_v20 = vsel %vm260_vm2, %v1529_v3, %v4065_v6  ;;  %v1354_v13 = vadd.f32 %v1344_v39, %v3921_v51  ;;  %v1429_v45 = vadd.f32 %v1410_v57, %v1359_v25 }
 0x1c4   :  { %v1430_v60 = vadd.f32 %v1411_v26, %v1360_v29  ;;  %v1565_v30 = vadd.f32 %v1547_v20, %v1495_v33  ;;  %v1480_v26 = vsel %vm189_vm1, %v1467_v40, %v1469_v5 }
 0x1c5   :  { %v1424_v41 = vadd.f32 %v1406_v4, %v1354_v13  ;;  %v1499_v40 = vadd.f32 %v1480_v26, %v1429_v45  ;;  %v2315_v45 = vld [vmem:[%s4293_s1 + $0x100] sm:$0xff]  }
 0x1c6   :  { %v4069_v17 = vpop.permute.xlu1 %1540  ;;  %v1539_v52 = vpop.permute.xlu0 %1538  ;;  %v1500_v27 = vadd.f32 %v1481_v24, %v1430_v60 }
 0x1c7   :  { %v1551_v12 = vsel %vm260_vm2, %v1539_v52, %v4069_v17  ;;  %v1494_v7 = vadd.f32 %v1476_v35, %v1424_v41 }
 0x1c8   :  { %v1570_v20 = vadd.f32 %v1551_v12, %v1500_v27 }
 0x1ca   :  { %v1537_v32 = vpop.permute.xlu1 %1536  ;;  %v1527_v9 = vpop.permute.xlu0 %1526 }
 0x1cb   :  { %v1550_v8 = vsel %vm260_vm2, %v1537_v32, %v1539_v52  ;;  %v1546_v51 = vsel %vm260_vm2, %v1527_v9, %v1529_v3 }
 0x1cc   :  { %v1569_v39 = vadd.f32 %v1550_v8, %v1499_v40  ;;  %v1564_v24 = vadd.f32 %v1546_v51, %v1494_v7 }
 0x1ce   :  { %v4091_v44 = vpop.permute.xlu1 %1600  ;;  %v1599_v50 = vpop.permute.xlu0 %1598 }
 0x1cf   :  { %v1617_v22 = vsel %vm331_vm3, %v1599_v50, %v4091_v44 }
 0x1d0   :  { %v1635_v19 = vadd.f32 %v1617_v22, %v1565_v30 }
 0x1d2   :  { %v4112_v29 = vpop.permute.xlu1 %1610  ;;  %v1609_v33 = vpop.permute.xlu0 %1608  ;;  %v1647_v21 = vadd.f32 %v4110_v0, %v1635_v19 }
 0x1d3   :  { %v1621_v5 = vsel %vm331_vm3, %v1609_v33, %v4112_v29 }
 0x1d4   :  { %v1640_v18 = vadd.f32 %v1621_v5, %v1570_v20  ;;  %v1657_v32 = vmax.f32 %v1647_v21, 0.0  ;;  %v2321_v5 = vld [vmem:[%s4293_s1 + $0x110] sm:$0xff]   ;;  %v2324_v21 = vld [vmem:[%s4293_s1 + $0x118] sm:$0xff]  }
 0x1d6   :  { %v1652_v60 = vadd.f32 %v4110_v0, %v1640_v18  ;;  %v1607_v30 = vpop.permute.xlu1 %1606  ;;  %v1597_v57 = vpop.permute.xlu0 %1596 }
 0x1d7   :  { %v1620_v4 = vsel %vm331_vm3, %v1607_v30, %v1609_v33  ;;  %v1616_v52 = vsel %vm331_vm3, %v1597_v57, %v1599_v50  ;;  %v2318_v33 = vld [vmem:[%s4293_s1 + $0x108] sm:$0xff]  }
 0x1d8   :  { %v1662_v3 = vmax.f32 %v1652_v60, 0.0  ;;  %v1639_v9 = vadd.f32 %v1620_v4, %v1569_v39  ;;  %v1634_v12 = vadd.f32 %v1616_v52, %v1564_v24  ;;  %v2327_v24 = vld [vmem:[%s4293_s1 + $0x120] sm:$0xff]   ;;  %v2330_v57 = vld [vmem:[%s4293_s1 + $0x128] ss:$0 sps:$4 sm:$0xff]  }
 0x1da   :  { %v1667_v22 = vpack.c.bf16 %v1662_v3, %v1657_v32  ;;  %v1651_v25 = vadd.f32 %v4110_v0, %v1639_v9  ;;  %v1646_v13 = vadd.f32 %v4110_v0, %v1634_v12  ;;  %v4124_v27 = vpop.permute.xlu1 %1073  ;;  %v1072_v19 = vpop.permute.xlu0 %1071  ;;  %v1997_v32 = vsel %vm1995_vm5, %v2330_v57, 0 }
 0x1db   :  { %v1027_v12 = vmul.f32 %v4525_v16, %v3749_v34  ;;  %v1348_v34 = vmul.f32 %v4063_v59, %v3875_v36  ;;  %v1088_v57 = vsel %vm118_vm0, %v1072_v19, %v4124_v27 }
 0x1dc   :  { %v1661_v26 = vmax.f32 %v1651_v25, 0.0  ;;  %v1656_v35 = vmax.f32 %v1646_v13, 0.0  ;;  %2031 = vmatprep.mubr.bf16.mxu0 %v1667_v22  ;;  %v4556_v13 = vld [vmem:[#allocation24_spill] sm:$0xff] }
 0x1de   :  { %v1666_v50 = vpack.c.bf16 %v1661_v26, %v1656_v35  ;;  %v4129_v41 = vpop.permute.xlu1 %1083  ;;  %v1082_v20 = vpop.permute.xlu0 %1081  ;;  %v1025_v26 = vmul.f32 %v4525_v16, %v4556_v13  ;;  %v1026_v35 = vmul.f32 %v4525_v16, %v3726_v43  ;;  %v1037_v43 = vadd.f32 %v1027_v12, %v4045_v10 }
 0x1e0   :  { %2032 = vmatmul.mubr.bf16.vlgmr.msra.gmra.mrb[0].mxu0 %v1666_v50  ;;  %v1036_v13 = vadd.f32 %v1026_v35, %v4052_v61 }
 0x1e1   :  { %2273 = vmatpush3.bf16.msra.mxu0 %v2315_v45  ;;  %2284 = vmatprep.mubr.msk.bf16.mxu0 %vm2353_vm4, %v2352_v62  ;;  %v4557_v45 = vld [vmem:[#allocation27_spill] sm:$0xff] }
 0x1e2   :  { %v4135_v8 = vpop.permute.xlu1 %1143  ;;  %v1142_v51 = vpop.permute.xlu0 %1141  ;;  %2274 = vmatprep.subr.bf16.mxu0 %v2352_v62  ;;  %v1030_v50 = vmul.f32 %v4525_v16, %v4557_v45  ;;  %v1107_v45 = vadd.f32 %v4124_v27, %v1037_v43 }
 0x1e3   :  { %v1157_v12 = vsel %vm189_vm1, %v3747_v11, %v1142_v51  ;;  %v1158_v61 = vsel %vm189_vm1, %v1142_v51, %v4135_v8 }
 0x1e5   :  { %2275 = vmatpush3.bf16.msra.mxu0 %v2318_v33  ;;  %v1031_v33 = vmul.f32 %v4525_v16, %v3783_v15 }
 0x1e6   :  { %v4141_v40 = vpop.permute.xlu1 %1153  ;;  %v4143_v7 = vpop.permute.xlu0 %1151  ;;  %2276 = vmatprep.subr.bf16.mxu0 %v2352_v62 }
 0x1e9   :  { %2277 = vmatpush3.bf16.msra.mxu0 %v2321_v5  ;;  %v4558_v5 = vld [vmem:[#allocation66_spill] sm:$0xff] }
 0x1ea   :  { %v1214_v18 = vpop.permute.xlu1 %1213  ;;  %v1212_v39 = vpop.permute.xlu0 %1211  ;;  %2278 = vmatprep.subr.bf16.mxu0 %v2352_v62 }
 0x1eb   :  { %v1227_v27 = vsel %vm260_vm2, %v3829_v54, %v1212_v39 }
 0x1ed   :  { %2279 = vmatpush3.bf16.msra.mxu0 %v2324_v21  ;;  %v4184_v21 = vmul.f32 %v4063_v59, %v4558_v5 }
 0x1ee   :  { %v4153_v60 = vpop.permute.xlu1 %1223  ;;  %v4155_v30 = vpop.permute.xlu0 %1221  ;;  %2280 = vmatprep.subr.bf16.mxu0 %v2352_v62 }
 0x1f1   :  { %2281 = vmatpush3.bf16.msra.mxu0 %v2327_v24  ;;  %v1347_v24 = vmul.f32 %v4063_v59, %v3878_v53  ;;  %v1091_v53 = vsel %vm118_vm0, %v3601_v55, %v1082_v20 }
 0x1f2   :  { %v1284_v4 = vpop.permute.xlu1 %1283  ;;  %v1282_v52 = vpop.permute.xlu0 %1281  ;;  %2282 = vmatprep.subr.bf16.mxu0 %v2352_v62  ;;  %v1032_v62 = vmul.f32 %v4525_v16, %v3777_v58  ;;  %v1087_v58 = vsel %vm118_vm0, %v3565_v31, %v1072_v19  ;;  %v1353_v16 = vmul.f32 %v4063_v59, %v3887_v46  ;;  %v1092_v31 = vsel %vm118_vm0, %v1082_v20, %v4129_v41 }
 0x1f3   :  { %v1040_v19 = vadd.f32 %v1030_v50, %v4059_v14  ;;  %v1041_v46 = vadd.f32 %v1031_v33, %v4061_v47  ;;  %v1228_v50 = vsel %vm260_vm2, %v1212_v39, %v1214_v18  ;;  %v1298_v54 = vsel %vm331_vm3, %v1282_v52, %v1284_v4 }
 0x1f4   :  { %v1042_v10 = vadd.f32 %v1032_v62, %v4054_v38  ;;  %v1161_v38 = vsel %vm189_vm1, %v3763_v37, %v4143_v7  ;;  %v1177_v62 = vadd.f32 %v4135_v8, %v1107_v45  ;;  %v1231_v37 = vsel %vm260_vm2, %v3839_v23, %v4155_v30 }
 0x1f5   :  { %2283 = vmatpush3.bf16.msra.mxu0 %v1997_v32  ;;  %v1035_v32 = vadd.f32 %v1025_v26, %v4050_v42  ;;  %v1106_v26 = vadd.f32 %v1088_v57, %v1036_v13  ;;  %v1110_v35 = vadd.f32 %v1091_v53, %v1040_v19  ;;  %v1111_v20 = vadd.f32 %v1092_v31, %v1041_v46 }
 0x1f6   :  { %v4162_v3 = vpop.permute.xlu1 %1293  ;;  %v1292_v9 = vpop.permute.xlu0 %1291  ;;  %v1112_v55 = vadd.f32 %v4129_v41, %v1042_v10  ;;  %v1162_v41 = vsel %vm189_vm1, %v4143_v7, %v4141_v40  ;;  %v1247_v43 = vadd.f32 %v1214_v18, %v1177_v62  ;;  %v1297_v8 = vsel %vm331_vm3, %v3860_v56, %v1282_v52 }
 0x1f7   :  { %v1105_v42 = vadd.f32 %v1087_v58, %v1035_v32  ;;  %v1176_v33 = vadd.f32 %v1158_v61, %v1106_v26  ;;  %v1180_v5 = vadd.f32 %v1161_v38, %v1110_v35  ;;  %v1232_v32 = vsel %vm260_vm2, %v4155_v30, %v4153_v60 }
 0x1f8   :  { %v1182_v51 = vadd.f32 %v4141_v40, %v1112_v55  ;;  %v1181_v13 = vadd.f32 %v1162_v41, %v1111_v20  ;;  %v1317_v23 = vadd.f32 %v1284_v4, %v1247_v43  ;;  %v1301_v18 = vsel %vm331_vm3, %v3883_v63, %v1292_v9 }
 0x1f9   :  { %v1175_v11 = vadd.f32 %v1157_v12, %v1105_v42  ;;  %v1246_v39 = vadd.f32 %v1228_v50, %v1176_v33  ;;  %v1250_v53 = vadd.f32 %v1231_v37, %v1180_v5  ;;  %v1302_v10 = vsel %vm331_vm3, %v1292_v9, %v4162_v3  ;;  %v4559_v12 = vld [vmem:[#allocation72_spill] sm:$0xff] }
 0x1fa   :  { %v4166_v22 = vpop.permute.xlu1 %1394  ;;  %v4168_v25 = vpop.permute.xlu0 %1392  ;;  %v1252_v57 = vadd.f32 %v4153_v60, %v1182_v51  ;;  %v1251_v19 = vadd.f32 %v1232_v32, %v1181_v13  ;;  %v1351_v60 = vmul.f32 %v4063_v59, %v4559_v12  ;;  %v1352_v30 = vmul.f32 %v4063_v59, %v3901_v28 }
 0x1fb   :  { %v1245_v58 = vadd.f32 %v1227_v27, %v1175_v11  ;;  %v1316_v56 = vadd.f32 %v1298_v54, %v1246_v39  ;;  %v1320_v46 = vadd.f32 %v1301_v18, %v1250_v53  ;;  %v1358_v26 = vadd.f32 %v1348_v34, %v1317_v23 }
 0x1fc   :  { %v1322_v52 = vadd.f32 %v4162_v3, %v1252_v57  ;;  %v1321_v42 = vadd.f32 %v1302_v10, %v1251_v19  ;;  %v1408_v63 = vsel %vm118_vm0, %v4003_v1, %v4168_v25  ;;  %v1409_v3 = vsel %vm118_vm0, %v4168_v25, %v4166_v22 }
 0x1fd   :  { %v1315_v31 = vadd.f32 %v1297_v8, %v1245_v58  ;;  %v1357_v61 = vadd.f32 %v1347_v24, %v1316_v56  ;;  %v1428_v35 = vadd.f32 %v4166_v22, %v1358_v26  ;;  %v1361_v38 = vadd.f32 %v1351_v60, %v1320_v46 }
 0x1fe   :  { %v4195_v15 = vpop.permute.xlu1 %1404  ;;  %v4197_v36 = vpop.permute.xlu0 %1402  ;;  %v1363_v55 = vadd.f32 %v1353_v16, %v1322_v52  ;;  %v1362_v16 = vadd.f32 %v1352_v30, %v1321_v42 }
 0x1ff   :  { %v1356_v9 = vadd.f32 %v4184_v21, %v1315_v31  ;;  %v1412_v28 = vsel %vm118_vm0, %v4019_v2, %v4197_v36  ;;  %v1427_v20 = vadd.f32 %v1409_v3, %v1357_v61  ;;  %v1413_v25 = vsel %vm118_vm0, %v4197_v36, %v4195_v15 }
 0x200   :  { %v1431_v11 = vadd.f32 %v1412_v28, %v1361_v38  ;;  %v1432_v50 = vadd.f32 %v1413_v25, %v1362_v16 }
 0x201   :  { %v1426_v1 = vadd.f32 %v1408_v63, %v1356_v9 }
 0x202   :  { %v1465_v14 = vpop.permute.xlu1 %1464  ;;  %v1463_v47 = vpop.permute.xlu0 %1462 }
 0x203   :  { %v1478_v59 = vsel %vm189_vm1, %v4041_v49, %v1463_v47  ;;  %v1479_v34 = vsel %vm189_vm1, %v1463_v47, %v1465_v14  ;;  %v1498_v22 = vadd.f32 %v1465_v14, %v1428_v35  ;;  %v1433_v49 = vadd.f32 %v4195_v15, %v1363_v55 }
 0x204   :  { %v1496_v47 = vadd.f32 %v1478_v59, %v1426_v1  ;;  %v1497_v27 = vadd.f32 %v1479_v34, %v1427_v20  ;;  %v2181_v1 = vld [vmem:[%s4294_s2] ss:$0 sm:$0xff] }
 0x206   :  { %v1475_v40 = vpop.permute.xlu1 %1474  ;;  %v1473_v7 = vpop.permute.xlu0 %1472 }
 0x207   :  { %v1482_v33 = vsel %vm189_vm1, %v4043_v48, %v1473_v7  ;;  %v1483_v36 = vsel %vm189_vm1, %v1473_v7, %v1475_v40  ;;  %v1503_v41 = vadd.f32 %v1475_v40, %v1433_v49 }
 0x208   :  { %v1501_v48 = vadd.f32 %v1482_v33, %v1431_v11  ;;  %v1502_v39 = vadd.f32 %v1483_v36, %v1432_v50 }
 0x20a   :  { %v1535_v45 = vpop.permute.xlu1 %1534  ;;  %v1533_v4 = vpop.permute.xlu0 %1532 }
 0x20b   :  { %v1548_v62 = vsel %vm260_vm2, %v4065_v6, %v1533_v4  ;;  %v1549_v2 = vsel %vm260_vm2, %v1533_v4, %v1535_v45  ;;  %v1568_v51 = vadd.f32 %v1535_v45, %v1498_v22 }
 0x20c   :  { %v1566_v37 = vadd.f32 %v1548_v62, %v1496_v47  ;;  %v1567_v14 = vadd.f32 %v1549_v2, %v1497_v27 }
 0x20e   :  { %v1545_v21 = vpop.permute.xlu1 %1544  ;;  %v1543_v24 = vpop.permute.xlu0 %1542 }
 0x20f   :  { %v1552_v6 = vsel %vm260_vm2, %v4069_v17, %v1543_v24  ;;  %v1553_v15 = vsel %vm260_vm2, %v1543_v24, %v1545_v21  ;;  %v1573_v40 = vadd.f32 %v1545_v21, %v1503_v41 }
 0x210   :  { %v1571_v7 = vadd.f32 %v1552_v6, %v1501_v48  ;;  %v1572_v13 = vadd.f32 %v1553_v15, %v1502_v39 }
 0x212   :  { %v1605_v5 = vpop.permute.xlu1 %1604  ;;  %v1603_v43 = vpop.permute.xlu0 %1602 }
 0x213   :  { %v1638_v8 = vadd.f32 %v1605_v5, %v1568_v51  ;;  %v1618_v54 = vsel %vm331_vm3, %v4091_v44, %v1603_v43  ;;  %v1619_v58 = vsel %vm331_vm3, %v1603_v43, %v1605_v5 }
 0x214   :  { %v1636_v57 = vadd.f32 %v1618_v54, %v1566_v37  ;;  %v1637_v32 = vadd.f32 %v1619_v58, %v1567_v14 }
 0x215   :  { %v1650_v17 = vadd.f32 %v4110_v0, %v1638_v8 }
 0x216   :  { %v1615_v53 = vpop.permute.xlu1 %1614  ;;  %v1613_v23 = vpop.permute.xlu0 %1612  ;;  %v1648_v44 = vadd.f32 %v4110_v0, %v1636_v57  ;;  %v1649_v52 = vadd.f32 %v4110_v0, %v1637_v32 }
 0x217   :  { %v1643_v18 = vadd.f32 %v1615_v53, %v1573_v40  ;;  %v1622_v31 = vsel %vm331_vm3, %v4112_v29, %v1613_v23  ;;  %v1623_v56 = vsel %vm331_vm3, %v1613_v23, %v1615_v53  ;;  %v1660_v30 = vmax.f32 %v1650_v17, 0.0 }
 0x218   :  { %v1641_v10 = vadd.f32 %v1622_v31, %v1571_v7  ;;  %v1642_v19 = vadd.f32 %v1623_v56, %v1572_v13  ;;  %v1658_v4 = vmax.f32 %v1648_v44, 0.0  ;;  %v1659_v42 = vmax.f32 %v1649_v52, 0.0 }
 0x219   :  { %v1655_v46 = vadd.f32 %v4110_v0, %v1643_v18 }
 0x21a   :  { %v1653_v12 = vadd.f32 %v4110_v0, %v1641_v10  ;;  %v1654_v60 = vadd.f32 %v4110_v0, %v1642_v19 }
 0x21b   :  { %v1665_v45 = vmax.f32 %v1655_v46, 0.0 }
 0x21c   :  { %v1663_v29 = vmax.f32 %v1653_v12, 0.0  ;;  %v1664_v26 = vmax.f32 %v1654_v60, 0.0 }
 0x21d   :  { %v1670_v63 = vpack.c.bf16 %v1665_v45, %v1660_v30 }
 0x21e   :  { %v1668_v3 = vpack.c.bf16 %v1663_v29, %v1658_v4  ;;  %v1669_v9 = vpack.c.bf16 %v1664_v26, %v1659_v42 }
 0x21f   :  { %1679 = vst.msk [vmem:[#allocation2 + $0x20] sm:$0xff] %vm1678_vm6, %v1670_v63 }
 0x220   :  { %2072 = vmatprep.mubr.bf16.mxu1 %v1669_v9 }
 0x221   :  { %2073 = vmatmul.mubr.bf16.vlgmr.msra.gmra.mrb[0].mxu1 %v1668_v3 }
 0x226   :  { %v1684_v61 = vld [vmem:[#allocation2 + $0x20] sm:$0xff] }
 0x227   :  { %2285 = vmatmul.mubr.msk.bf16.vlgmr.msra.gmra.mrb[4].mxu0 %vm1678_vm6, %v1684_v61 }
 0x2b3   :  { %v2237_v55 = vpop.f32.mrb[0].mxu0 }
 0x2b4   :  { %v2238_v35 = vpop.f32.mrb[1].mxu0 }
 0x2b5   :  { %v2239_v28 = vadd.f32 %v2238_v35, %v2237_v55  ;;  %v2240_v59 = vpop.f32.mrb[2].mxu0 }
 0x2b6   :  { %v2241_v0 = vpop.f32.mrb[3].mxu0 }
 0x2b7   :  { %v2242_v34 = vadd.f32 %v2241_v0, %v2240_v59  ;;  %v2034_v25 = vadd.f32 %v2239_v28, %v2181_v1 }
 0x2b9   :  { %v2037_v22 = vadd.f32 %v2242_v34, %v2181_v1 }
 0x2f4   :  { %v2259_v20 = vpop.f32.mrb[0].mxu1 }
 0x2f5   :  { %v2260_v38 = vpop.f32.mrb[1].mxu1 }
 0x2f6   :  { %v2261_v21 = vadd.f32 %v2260_v38, %v2259_v20  ;;  %v2262_v24 = vpop.f32.mrb[2].mxu1 }
 0x2f7   :  { %v2263_v16 = vpop.f32.mrb[3].mxu1 }
 0x2f8   :  { %v2075_v62 = vadd.f32 %v2261_v21, %v2034_v25  ;;  %v2264_v2 = vadd.f32 %v2263_v16, %v2262_v24 }
 0x2fa   :  { %v2115_v49 = vpop.f32.mrb[4].mxu0  ;;  %v2078_v11 = vadd.f32 %v2264_v2, %v2037_v22 }
 0x2fb   :  { %v2286_v47 = vpop.f32.mrb[5].mxu0  ;;  %v2116_v27 = vadd.f32 %v2115_v49, %v2075_v62 }
 0x2fc   :  { %v2118_v50 = vpop.f32.mrb[6].mxu0 }
 0x2fd   :  { %2122 = vst [vmem:[%s4297_s5] sm:$0xff] %v2116_v27  ;;  %v2287_v33 = vpop.f32.mrb[7].mxu0  ;;  %v2119_v36 = vadd.f32 %v2118_v50, %v2078_v11 }
 0x2ff   :  { %2123 = vst [vmem:[%s4297_s5 + $0x8] sm:$0xff] %v2119_v36 }
 0x300   :  { %2128 = vsyncpa [#allocation5], 1 }

</bundles_post_ra>
